<compile_context>
chip_gen: v5e
topology: v5e:2x2
jax: 0.10.0
libtpu: 0.0.40
codegen_flags: <defaults>
</compile_context>

<pallas_src>
import jax
import jax.numpy as jnp
from jax.experimental import pallas as pl
from jax.experimental.pallas import tpu as pltpu


# --------------------------------------------------------------------------
# Kernels
# --------------------------------------------------------------------------

def aff_fused_kernel(x_ref, r_ref, w1_ref, b1_ref, w2h_ref, b2h_ref,
                     wg1_ref, bg1_ref, wg2h_ref, bg2h_ref, o_ref):
    """One batch element fully resident in VMEM.

    x_ref / r_ref / o_ref: (C, HW).  Weights (BN-folded) are resident;
    w2h/b2h/wg2h/bg2h already carry the extra 0.5 factor for the tanh form.
    """
    x = x_ref[...]
    r = r_ref[...]
    xa = (x + r).astype(jnp.float32)          # x + residual
    d = (x - r).astype(jnp.float32)           # x - residual

    # Local attention branch: 1x1 conv -> BN -> ReLU -> 1x1 conv -> BN.
    h = jnp.maximum(
        jnp.dot(w1_ref[...], xa, preferred_element_type=jnp.float32)
        + b1_ref[...], 0.0)                                        # (Ci, HW)
    z = jnp.dot(w2h_ref[...], h, preferred_element_type=jnp.float32)  # (C, HW)

    # Global attention branch, in-kernel from the resident slab:
    # AdaptiveAvgPool2d(1) -> 1x1 conv -> BN -> ReLU -> 1x1 conv -> BN.
    ga = jnp.mean(xa, axis=1, keepdims=True)                       # (C, 1)
    hg = jnp.maximum(
        jnp.dot(wg1_ref[...], ga, preferred_element_type=jnp.float32)
        + bg1_ref[...], 0.0)                                        # (Ci, 1)
    zg = (jnp.dot(wg2h_ref[...], hg, preferred_element_type=jnp.float32)
          + bg2h_ref[...] + b2h_ref[...])                           # (C, 1)

    # 2*x*sig(s) + 2*r*(1-sig(s)) == (x+r) + (x-r)*tanh(s/2); 0.5 pre-folded.
    o_ref[...] = (xa + d * jnp.tanh(z + zg)).astype(o_ref.dtype)


def aff_tiled_kernel(x_ref, r_ref, bgh_ref, w1_ref, b1_ref, w2h_ref, o_ref):
    """Fallback: (C, T) spatial tile; global branch folded into bgh (C, 1)."""
    x = x_ref[...]
    r = r_ref[...]
    xa = (x + r).astype(jnp.float32)
    d = (x - r).astype(jnp.float32)
    h = jnp.maximum(
        jnp.dot(w1_ref[...], xa, preferred_element_type=jnp.float32)
        + b1_ref[...], 0.0)
    z = (jnp.dot(w2h_ref[...], h, preferred_element_type=jnp.float32)
         + bgh_ref[...])
    o_ref[...] = (xa + d * jnp.tanh(z)).astype(o_ref.dtype)


# --------------------------------------------------------------------------
# Sizing helpers (generation-aware)
# --------------------------------------------------------------------------

def _round_up(x, m):
    return ((x + m - 1) // m) * m


def _vmem_budget_bytes():
    """(tile-sizing budget, vmem_limit_bytes) derived from physical VMEM."""
    cap = 64 * 1024 * 1024  # conservative default (v7x-sized)
    try:
        info = pltpu.get_tpu_info()
        cap = int(getattr(info, "vmem_capacity_bytes", cap))
    except Exception:
        pass
    budget = min(cap // 2, 48 * 1024 * 1024)          # ~48 MiB v5e/v6e, ~32 MiB v7x
    limit = min((cap * 3) // 4, 96 * 1024 * 1024)     # headroom over the budget
    return budget, limit


def _per_column_bytes(c, ci):
    """Per spatial-column f32 residency: 2 pipeline buffers x 3 I/O tiles
    (x, r, out) + xa/d/z/tanh (C each) + h (Ci) intermediates, with margin."""
    return (2 * 3 * c + 4 * c + 2 * ci) * 4


def _choose_hw_tile(hw, c, ci, budget_bytes, max_tile=None):
    cap = max(128, (budget_bytes // _per_column_bytes(c, ci)) // 128 * 128)
    if max_tile is not None:
        cap = min(cap, max(128, (max_tile // 128) * 128))
    return min(cap, _round_up(hw, 128))


# --------------------------------------------------------------------------
# Forward wrappers
# --------------------------------------------------------------------------

def _halved_second_stage(params):
    """Fold the 0.5 of the tanh identity into the second conv of each branch."""
    return (0.5 * params["w2"], 0.5 * params["b2"],
            0.5 * params["wg2"], 0.5 * params["bg2"])


def _aff_fused(x, r, params, *, vmem_limit):
    N, C, HW = x.shape
    w1, b1 = params["w1"], params["b1"]
    wg1, bg1 = params["wg1"], params["bg1"]
    w2h, b2h, wg2h, bg2h = _halved_second_stage(params)
    Ci = w1.shape[0]

    io_spec = pl.BlockSpec((pl.Squeezed(), C, HW), lambda n: (n, 0, 0))
    w_spec = lambda shape: pl.BlockSpec(shape, lambda n: (0, 0))

    return pl.pallas_call(
        aff_fused_kernel,
        out_shape=jax.ShapeDtypeStruct((N, C, HW), x.dtype),
        grid_spec=pltpu.PrefetchScalarGridSpec(
            num_scalar_prefetch=0,
            grid=(N,),
            in_specs=[
                io_spec,            # x
                io_spec,            # residual
                w_spec((Ci, C)),    # w1 (local conv1 + BN)
                w_spec((Ci, 1)),    # b1
                w_spec((C, Ci)),    # 0.5 * w2 (local conv2 + BN)
                w_spec((C, 1)),     # 0.5 * b2
                w_spec((Ci, C)),    # wg1 (global conv1 + BN)
                w_spec((Ci, 1)),    # bg1
                w_spec((C, Ci)),    # 0.5 * wg2 (global conv2 + BN)
                w_spec((C, 1)),     # 0.5 * bg2
            ],
            out_specs=io_spec,
        ),
        compiler_params=pltpu.CompilerParams(
            # Batch elements are independent: on a v7x megacore they split
            # across the two TensorCores.
            dimension_semantics=("parallel",),
            vmem_limit_bytes=vmem_limit),
    )(x, r, w1, b1, w2h, b2h, wg1, bg1, wg2h, bg2h)


def _aff_tiled(x, r, params, *, budget, vmem_limit, hw_tile=None):
    N, C, HW = x.shape
    w1, b1 = params["w1"], params["b1"]
    wg1, bg1 = params["wg1"], params["bg1"]
    w2h, b2h, wg2h, bg2h = _halved_second_stage(params)
    Ci = w1.shape[0]

    # Global attention branch hoisted to XLA over the whole batch (tiny work).
    ga = jnp.mean((x + r).astype(jnp.float32), axis=2)         # (N, C)
    hg = jnp.maximum(ga @ wg1.T + bg1[:, 0], 0.0)              # (N, Ci)
    xg_half = hg @ wg2h.T + bg2h[:, 0]                         # (N, C) = 0.5*xg
    bgh = (xg_half + b2h[:, 0])[:, :, None]                    # (N, C, 1)

    T = _choose_hw_tile(HW, C, Ci, budget, max_tile=hw_tile)
    HW_pad = _round_up(HW, T)
    if HW_pad != HW:
        pad = ((0, 0), (0, 0), (0, HW_pad - HW))
        x = jnp.pad(x, pad)
        r = jnp.pad(r, pad)
    grid = (N, HW_pad // T)

    io_spec = pl.BlockSpec((pl.Squeezed(), C, T), lambda n, t: (n, 0, t))
    bg_spec = pl.BlockSpec((pl.Squeezed(), C, 1), lambda n, t: (n, 0, 0))
    w_spec = lambda shape: pl.BlockSpec(shape, lambda n, t: (0, 0))

    out = pl.pallas_call(
        aff_tiled_kernel,
        out_shape=jax.ShapeDtypeStruct((N, C, HW_pad), x.dtype),
        grid_spec=pltpu.PrefetchScalarGridSpec(
            num_scalar_prefetch=0,
            grid=grid,
            in_specs=[
                io_spec,            # x tile
                io_spec,            # residual tile
                bg_spec,            # per-batch 0.5*(b2 + xg)
                w_spec((Ci, C)),    # w1
                w_spec((Ci, 1)),    # b1
                w_spec((C, Ci)),    # 0.5 * w2
            ],
            out_specs=io_spec,
        ),
        compiler_params=pltpu.CompilerParams(
            dimension_semantics=("parallel", "parallel"),
            vmem_limit_bytes=vmem_limit),
    )(x, r, bgh, w1, b1, w2h)

    if HW_pad != HW:
        out = out[:, :, :HW]
    return out


def aff_forward(x_nchw, res_nchw, params, *, force_tiled=False, hw_tile=None):
    """x_nchw, res_nchw: (N, C, H, W).  params: BN-folded conv weights in
    PyTorch Conv2d layout (weight = (Cout, Cin), bias = (Cout, 1))."""
    N, C, H, W = x_nchw.shape
    HW = H * W
    x = x_nchw.reshape(N, C, HW)
    r = res_nchw.reshape(N, C, HW)
    Ci = params["w1"].shape[0]

    budget, vmem_limit = _vmem_budget_bytes()
    fused_bytes = _per_column_bytes(C, Ci) * HW   # per-batch-element residency
    use_fused = (not force_tiled) and fused_bytes <= budget

    if use_fused:
        out = _aff_fused(x, r, params, vmem_limit=vmem_limit)
    else:
        out = _aff_tiled(x, r, params, budget=budget, vmem_limit=vmem_limit,
                         hw_tile=hw_tile)
    return out.reshape(N, C, H, W)


# --------------------------------------------------------------------------
# Parameter prep (eval-mode BN folding) and pure-JAX reference
# --------------------------------------------------------------------------

def fold_conv_bn(w, b, gamma, beta, mean, var, eps=1e-5):
    """Fold eval-mode BatchNorm2d into a preceding 1x1 conv.
    w: (Cout, Cin), b: (Cout,).  Returns (w_eff (Cout, Cin), b_eff (Cout, 1))."""
    s = gamma / jnp.sqrt(var + eps)
    w_eff = w * s[:, None]
    b_eff = (b - mean) * s + beta
    return w_eff, b_eff[:, None]


def make_params(key, channels=64, r=4):
    ci = channels // r
    ks = jax.random.split(key, 12)

    def conv_w(k, cout, cin):
        return jax.random.normal(k, (cout, cin), jnp.float32) * (1.0 / jnp.sqrt(cin))

    def bn(k, c):
        k1, k2, k3, k4 = jax.random.split(k, 4)
        gamma = 1.0 + 0.1 * jax.random.normal(k1, (c,), jnp.float32)
        beta = 0.1 * jax.random.normal(k2, (c,), jnp.float32)
        mean = 0.1 * jax.random.normal(k3, (c,), jnp.float32)
        var = 1.0 + 0.1 * jax.random.uniform(k4, (c,), jnp.float32)
        return gamma, beta, mean, var

    # local branch
    w1 = conv_w(ks[0], ci, channels)
    b1 = 0.05 * jax.random.normal(ks[1], (ci,), jnp.float32)
    w2 = conv_w(ks[2], channels, ci)
    b2 = 0.05 * jax.random.normal(ks[3], (channels,), jnp.float32)
    w1f, b1f = fold_conv_bn(w1, b1, *bn(ks[4], ci))
    w2f, b2f = fold_conv_bn(w2, b2, *bn(ks[5], channels))

    # global branch
    wg1 = conv_w(ks[6], ci, channels)
    bg1 = 0.05 * jax.random.normal(ks[7], (ci,), jnp.float32)
    wg2 = conv_w(ks[8], channels, ci)
    bg2 = 0.05 * jax.random.normal(ks[9], (channels,), jnp.float32)
    wg1f, bg1f = fold_conv_bn(wg1, bg1, *bn(ks[10], ci))
    wg2f, bg2f = fold_conv_bn(wg2, bg2, *bn(ks[11], channels))

    return {"w1": w1f, "b1": b1f, "w2": w2f, "b2": b2f,
            "wg1": wg1f, "bg1": bg1f, "wg2": wg2f, "bg2": bg2f}


def aff_reference(x, res, p):
    """Plain-JAX reference (sigmoid form, same folded params)."""
    N, C, H, W = x.shape
    xa = (x + res).reshape(N, C, H * W)
    hl = jnp.maximum(jnp.einsum("oc,ncp->nop", p["w1"], xa) + p["b1"][None], 0.0)
    xl = jnp.einsum("co,nop->ncp", p["w2"], hl) + p["b2"][None]
    ga = jnp.mean(xa, axis=2)                                   # (N, C)
    hg = jnp.maximum(ga @ p["wg1"].T + p["bg1"][:, 0], 0.0)
    xg = hg @ p["wg2"].T + p["bg2"][:, 0]
    wei = jax.nn.sigmoid(xl + xg[:, :, None]).reshape(N, C, H, W)
    return 2.0 * x * wei + 2.0 * res * (1.0 - wei)


# --------------------------------------------------------------------------

if __name__ == "__main__":
    key = jax.random.PRNGKey(0)
    k_x, k_r, k_p = jax.random.split(key, 3)

    # channels=64 / r=4 are the AFF defaults (inter_channels = 16).
    N, C, H, W = 2, 64, 32, 32
    x = jax.random.normal(k_x, (N, C, H, W), jnp.float32)
    residual = jax.random.normal(k_r, (N, C, H, W), jnp.float32)
    params = make_params(k_p, channels=C, r=4)

    ref = aff_reference(x, residual, params)

    # Primary path: fused per-batch-element kernel (one read of x/r, one write).
    out = jax.block_until_ready(aff_forward(x, residual, params))
    assert out.shape == (N, C, H, W)
    assert jnp.allclose(out, ref, atol=1e-4, rtol=1e-4), \
        float(jnp.max(jnp.abs(out - ref)))

    # Fallback path (hoisted global branch + spatial tiling), forced, with a
    # tile (384) that does not divide HW=1024 to exercise the pad-and-slice
    # handling of non-divisible spatial extents.
    out_t = jax.block_until_ready(
        aff_forward(x, residual, params, force_tiled=True, hw_tile=384))
    assert jnp.allclose(out_t, ref, atol=1e-4, rtol=1e-4), \
        float(jnp.max(jnp.abs(out_t - ref)))

    print("KERNEL_OK")
</pallas_src>

<mosaic_0001>
module attributes {stable_mosaic.version = 11 : i64} {
  func.func @aff_fused_kernel(%arg0: i32, %arg1: memref<1x64x1024xf32, #tpu.memory_space<vmem>>, %arg2: memref<1x64x1024xf32, #tpu.memory_space<vmem>>, %arg3: memref<16x64xf32, #tpu.memory_space<vmem>>, %arg4: memref<16x1xf32, #tpu.memory_space<vmem>>, %arg5: memref<64x16xf32, #tpu.memory_space<vmem>>, %arg6: memref<64x1xf32, #tpu.memory_space<vmem>>, %arg7: memref<16x64xf32, #tpu.memory_space<vmem>>, %arg8: memref<16x1xf32, #tpu.memory_space<vmem>>, %arg9: memref<64x16xf32, #tpu.memory_space<vmem>>, %arg10: memref<64x1xf32, #tpu.memory_space<vmem>>, %arg11: memref<1x64x1024xf32, #tpu.memory_space<vmem>>) attributes {dimension_semantics = [#tpu.dimension_semantics<parallel>], iteration_bounds = array<i64: 2>, scalar_prefetch = 0 : i64, scratch_operands = 0 : i64, tpu.core_type = #tpu.core_type<tc>, window_params = [{transform_indices = @transform_0, window_bounds = array<i64: 1, 64, 1024>}, {transform_indices = @transform_1, window_bounds = array<i64: 1, 64, 1024>}, {pipeline_mode = #tpu.pipeline_mode<synchronous>, transform_indices = @transform_2, window_bounds = array<i64: 16, 64>}, {pipeline_mode = #tpu.pipeline_mode<synchronous>, transform_indices = @transform_3, window_bounds = array<i64: 16, 1>}, {pipeline_mode = #tpu.pipeline_mode<synchronous>, transform_indices = @transform_4, window_bounds = array<i64: 64, 16>}, {pipeline_mode = #tpu.pipeline_mode<synchronous>, transform_indices = @transform_5, window_bounds = array<i64: 64, 1>}, {pipeline_mode = #tpu.pipeline_mode<synchronous>, transform_indices = @transform_6, window_bounds = array<i64: 16, 64>}, {pipeline_mode = #tpu.pipeline_mode<synchronous>, transform_indices = @transform_7, window_bounds = array<i64: 16, 1>}, {pipeline_mode = #tpu.pipeline_mode<synchronous>, transform_indices = @transform_8, window_bounds = array<i64: 64, 16>}, {pipeline_mode = #tpu.pipeline_mode<synchronous>, transform_indices = @transform_9, window_bounds = array<i64: 64, 1>}, {transform_indices = @transform_10, window_bounds = array<i64: 1, 64, 1024>}]} {
    %c0 = arith.constant 0 : index
    %c0_0 = arith.constant 0 : index
    %c0_1 = arith.constant 0 : index
    %0 = vector.load %arg1[%c0, %c0_0, %c0_1] : memref<1x64x1024xf32, #tpu.memory_space<vmem>>, vector<1x64x1024xf32>
    %1 = vector.shape_cast %0 : vector<1x64x1024xf32> to vector<64x1024xf32>
    %c0_2 = arith.constant 0 : index
    %c0_3 = arith.constant 0 : index
    %c0_4 = arith.constant 0 : index
    %2 = vector.load %arg2[%c0_2, %c0_3, %c0_4] : memref<1x64x1024xf32, #tpu.memory_space<vmem>>, vector<1x64x1024xf32>
    %3 = vector.shape_cast %2 : vector<1x64x1024xf32> to vector<64x1024xf32>
    %4 = arith.addf %1, %3 : vector<64x1024xf32>
    %5 = arith.subf %1, %3 : vector<64x1024xf32>
    %c0_5 = arith.constant 0 : index
    %c0_6 = arith.constant 0 : index
    %6 = vector.load %arg3[%c0_5, %c0_6] : memref<16x64xf32, #tpu.memory_space<vmem>>, vector<16x64xf32>
    %cst = arith.constant dense<0.000000e+00> : vector<16x1024xf32>
    %7 = tpu.matmul %6, %4, %cst {dimension_numbers = #tpu.dot_dimension_numbers<[1], [0], [0], [1], [0, 0, 1, 1], [], []>} : vector<16x64xf32>, vector<64x1024xf32>, vector<16x1024xf32> -> vector<16x1024xf32>
    %c0_7 = arith.constant 0 : index
    %c0_8 = arith.constant 0 : index
    %8 = vector.load %arg4[%c0_7, %c0_8] : memref<16x1xf32, #tpu.memory_space<vmem>>, vector<16x1xf32>
    %9 = vector.broadcast %8 : vector<16x1xf32> to vector<16x1024xf32>
    %10 = arith.addf %7, %9 : vector<16x1024xf32>
    %cst_9 = arith.constant 0.000000e+00 : f32
    %11 = vector.broadcast %cst_9 : f32 to vector<16x1024xf32>
    %12 = arith.maximumf %10, %11 : vector<16x1024xf32>
    %c0_10 = arith.constant 0 : index
    %c0_11 = arith.constant 0 : index
    %13 = vector.load %arg5[%c0_10, %c0_11] : memref<64x16xf32, #tpu.memory_space<vmem>>, vector<64x16xf32>
    %cst_12 = arith.constant dense<0.000000e+00> : vector<64x1024xf32>
    %14 = tpu.matmul %13, %12, %cst_12 {dimension_numbers = #tpu.dot_dimension_numbers<[1], [0], [0], [1], [0, 0, 1, 1], [], []>} : vector<64x16xf32>, vector<16x1024xf32>, vector<64x1024xf32> -> vector<64x1024xf32>
    %cst_13 = arith.constant dense<0.000000e+00> : vector<64xf32>
    %15 = vector.multi_reduction <add>, %4, %cst_13 [1] : vector<64x1024xf32> to vector<64xf32>
    %16 = vector.shape_cast %15 : vector<64xf32> to vector<64x1xf32>
    %cst_14 = arith.constant 1.024000e+03 : f32
    %17 = vector.broadcast %cst_14 : f32 to vector<64x1xf32>
    %18 = arith.divf %16, %17 : vector<64x1xf32>
    %c0_15 = arith.constant 0 : index
    %c0_16 = arith.constant 0 : index
    %19 = vector.load %arg7[%c0_15, %c0_16] : memref<16x64xf32, #tpu.memory_space<vmem>>, vector<16x64xf32>
    %cst_17 = arith.constant dense<0.000000e+00> : vector<16x1xf32>
    %20 = tpu.matmul %19, %18, %cst_17 {dimension_numbers = #tpu.dot_dimension_numbers<[1], [0], [0], [1], [0, 0, 1, 1], [], []>} : vector<16x64xf32>, vector<64x1xf32>, vector<16x1xf32> -> vector<16x1xf32>
    %c0_18 = arith.constant 0 : index
    %c0_19 = arith.constant 0 : index
    %21 = vector.load %arg8[%c0_18, %c0_19] : memref<16x1xf32, #tpu.memory_space<vmem>>, vector<16x1xf32>
    %22 = arith.addf %20, %21 : vector<16x1xf32>
    %cst_20 = arith.constant 0.000000e+00 : f32
    %23 = vector.broadcast %cst_20 : f32 to vector<16x1xf32>
    %24 = arith.maximumf %22, %23 : vector<16x1xf32>
    %c0_21 = arith.constant 0 : index
    %c0_22 = arith.constant 0 : index
    %25 = vector.load %arg9[%c0_21, %c0_22] : memref<64x16xf32, #tpu.memory_space<vmem>>, vector<64x16xf32>
    %cst_23 = arith.constant dense<0.000000e+00> : vector<64x1xf32>
    %26 = tpu.matmul %25, %24, %cst_23 {dimension_numbers = #tpu.dot_dimension_numbers<[1], [0], [0], [1], [0, 0, 1, 1], [], []>} : vector<64x16xf32>, vector<16x1xf32>, vector<64x1xf32> -> vector<64x1xf32>
    %c0_24 = arith.constant 0 : index
    %c0_25 = arith.constant 0 : index
    %27 = vector.load %arg10[%c0_24, %c0_25] : memref<64x1xf32, #tpu.memory_space<vmem>>, vector<64x1xf32>
    %28 = arith.addf %26, %27 : vector<64x1xf32>
    %c0_26 = arith.constant 0 : index
    %c0_27 = arith.constant 0 : index
    %29 = vector.load %arg6[%c0_26, %c0_27] : memref<64x1xf32, #tpu.memory_space<vmem>>, vector<64x1xf32>
    %30 = arith.addf %28, %29 : vector<64x1xf32>
    %31 = vector.broadcast %30 : vector<64x1xf32> to vector<64x1024xf32>
    %32 = arith.addf %14, %31 : vector<64x1024xf32>
    %33 = math.tanh %32 : vector<64x1024xf32>
    %34 = arith.mulf %5, %33 : vector<64x1024xf32>
    %35 = arith.addf %4, %34 : vector<64x1024xf32>
    %c0_28 = arith.constant 0 : index
    %c0_29 = arith.constant 0 : index
    %c0_30 = arith.constant 0 : index
    %36 = vector.load %arg11[%c0_28, %c0_29, %c0_30] : memref<1x64x1024xf32, #tpu.memory_space<vmem>>, vector<1x64x1024xf32>
    %37 = vector.shape_cast %36 : vector<1x64x1024xf32> to vector<64x1024xf32>
    %38 = vector.shape_cast %35 : vector<64x1024xf32> to vector<1x64x1024xf32>
    tpu.vector_store %arg11[%c0_28, %c0_29, %c0_30], %38 {strides = array<i32>} : memref<1x64x1024xf32, #tpu.memory_space<vmem>>, vector<1x64x1024xf32>,
    return
  }
  func.func @transform_0(%arg0: i32) -> (i32, i32, i32) {
    %c0_i32 = arith.constant 0 : i32
    %c0_i32_0 = arith.constant 0 : i32
    %c0_i32_1 = arith.constant 0 : i32
    return %arg0, %c0_i32, %c0_i32_0 : i32, i32, i32
  }
  func.func @transform_1(%arg0: i32) -> (i32, i32, i32) {
    %c0_i32 = arith.constant 0 : i32
    %c0_i32_0 = arith.constant 0 : i32
    %c0_i32_1 = arith.constant 0 : i32
    return %arg0, %c0_i32, %c0_i32_0 : i32, i32, i32
  }
  func.func @transform_2(%arg0: i32) -> (i32, i32) {
    %c0_i32 = arith.constant 0 : i32
    %c0_i32_0 = arith.constant 0 : i32
    %c0_i32_1 = arith.constant 0 : i32
    return %c0_i32, %c0_i32_0 : i32, i32
  }
  func.func @transform_3(%arg0: i32) -> (i32, i32) {
    %c0_i32 = arith.constant 0 : i32
    %c0_i32_0 = arith.constant 0 : i32
    %c0_i32_1 = arith.constant 0 : i32
    return %c0_i32, %c0_i32_0 : i32, i32
  }
  func.func @transform_4(%arg0: i32) -> (i32, i32) {
    %c0_i32 = arith.constant 0 : i32
    %c0_i32_0 = arith.constant 0 : i32
    %c0_i32_1 = arith.constant 0 : i32
    return %c0_i32, %c0_i32_0 : i32, i32
  }
  func.func @transform_5(%arg0: i32) -> (i32, i32) {
    %c0_i32 = arith.constant 0 : i32
    %c0_i32_0 = arith.constant 0 : i32
    %c0_i32_1 = arith.constant 0 : i32
    return %c0_i32, %c0_i32_0 : i32, i32
  }
  func.func @transform_6(%arg0: i32) -> (i32, i32) {
    %c0_i32 = arith.constant 0 : i32
    %c0_i32_0 = arith.constant 0 : i32
    %c0_i32_1 = arith.constant 0 : i32
    return %c0_i32, %c0_i32_0 : i32, i32
  }
  func.func @transform_7(%arg0: i32) -> (i32, i32) {
    %c0_i32 = arith.constant 0 : i32
    %c0_i32_0 = arith.constant 0 : i32
    %c0_i32_1 = arith.constant 0 : i32
    return %c0_i32, %c0_i32_0 : i32, i32
  }
  func.func @transform_8(%arg0: i32) -> (i32, i32) {
    %c0_i32 = arith.constant 0 : i32
    %c0_i32_0 = arith.constant 0 : i32
    %c0_i32_1 = arith.constant 0 : i32
    return %c0_i32, %c0_i32_0 : i32, i32
  }
  func.func @transform_9(%arg0: i32) -> (i32, i32) {
    %c0_i32 = arith.constant 0 : i32
    %c0_i32_0 = arith.constant 0 : i32
    %c0_i32_1 = arith.constant 0 : i32
    return %c0_i32, %c0_i32_0 : i32, i32
  }
  func.func @transform_10(%arg0: i32) -> (i32, i32, i32) {
    %c0_i32 = arith.constant 0 : i32
    %c0_i32_0 = arith.constant 0 : i32
    %c0_i32_1 = arith.constant 0 : i32
    return %arg0, %c0_i32, %c0_i32_0 : i32, i32, i32
  }
}

</mosaic_0001>

<bundles_post_ra>
// kernel: tpu_custom_call.1
= control target key start
LH: loop header
LB: loop body
LE: loop exit
PB: predicated region body
PF: predicated region fallthrough
CT: control target
= control target key end

     0   :  { %s4272_s0 = inlined_call_operand.hbm [shape: f32[2,64,1024], index: 0, kind: input, shape index: {}]   ;;  %s4273_s1 = inlined_call_operand.hbm [shape: f32[2,64,1024], index: 1, kind: input, shape index: {}]   ;;  %s4274_s2 = inlined_call_operand.vmem [shape: f32[16,64], index: 2, kind: input, shape index: {}]   ;;  %s4275_s3 = inlined_call_operand.vmem [shape: f32[16,1], index: 3, kind: input, shape index: {}]   ;;  %s4276_s4 = inlined_call_operand.vmem [shape: f32[64,16], index: 4, kind: input, shape index: {}]   ;;  %s4277_s5 = inlined_call_operand.vmem [shape: f32[64,1], index: 5, kind: input, shape index: {}]   ;;  %s4278_s6 = inlined_call_operand.vmem [shape: f32[16,64], index: 6, kind: input, shape index: {}]   ;;  %s4279_s7 = inlined_call_operand.vmem [shape: f32[16,1], index: 7, kind: input, shape index: {}]   ;;  %s4280_s8 = inlined_call_operand.vmem [shape: f32[64,16], index: 8, kind: input, shape index: {}]   ;;  %s4281_s9 = inlined_call_operand.vmem [shape: f32[64,1], index: 9, kind: input, shape index: {}]   ;;  %s4282_s10 = inlined_call_operand.hbm [shape: f32[2,64,1024], index: 10, kind: output, shape index: {}]  }
   0x1   :  { %4451 = sst [smem:[#allocation189_spill]] %s4272_s0 }
   0x2   :  { %4452 = sst [smem:[#allocation190_spill]] %s4282_s10 }
   0x3   :  { %15 = vsyncpa [#allocation3], 0 }
   0x4   :  { %17 = vsyncpa [#allocation3 + $0x1], 0 }
   0x5   :  { %18 = vsyncpa [#allocation6], 0 }
   0x6   :  { %20 = vsyncpa [#allocation6 + $0x1], 0 }
   0x7   :  { %21 = vsyncpa [#allocation4], 0 }
   0x8   :  { %23 = vsyncpa [#allocation4 + $0x1], 0  ;;  %s2397_s13 = smov 0   ;;  %s2399_s14 = smov 0  }
   0x9   :  { %s2401_s15 = smov 0   ;;  %s2403_s16 = smov 0  }
   0xa LB: > { %4453 = sst [smem:[#allocation11_spill]] %s2322_s13  ;;  %s2418_s17 = sadd.s32 4294967295, %s2334_s16   ;;  %s2334_s16 = sphi %s2403_s16, %s4875_s16   ;;  %s2330_s15 = sphi %s2401_s15, %s4880_s15   ;;  %s2326_s14 = sphi %s2399_s14, %s4879_s14   ;;  %s2322_s13 = sphi %s2397_s13, %s4878_s13  }
   0xb   : > { %4454 = sst [smem:[#allocation12_spill]] %s2330_s15  ;;  %s1887_s18 = sadd.s32 4294967294, %s2334_s16  }
   0xc   : > { %s2422_s19 = sadd.s32 1, %s2334_s16   ;;  %s36_s20 = sadd.s32 1, %s2330_s15 }
   0xd   : > { %4455 = sst [smem:[#allocation13_spill]] %s2422_s19  ;;  %s33_s21 = ssub.s32 %s2334_s16, %s2422_s19 }
   0xe   : > { %p43_p0 = scmp.ne.s32.totalorder %s2330_s15, %s2326_s14  ;;  %p34_p1 = scmp.eq.s32.totalorder %s33_s21, 0 }
   0xf   : > { %p44_p2 = scmp.eq.s32.totalorder %s2334_s16, 0  ;;  %p49_p3 = scmp.ne.s32.totalorder %s2326_s14, %s2322_s13 }
  0x10   : > { %p50_p4 = scmp.eq.s32.totalorder %s2418_s17, 0  ;;  %p267_p7 = scmp.eq.s32.totalorder %s2418_s17, 1 }
  0x11   : > { %s2434_s22 = scalar_select %p34_p1, %s2330_s15, %s36_s20  }
  0x12   : > { %p2436_p5 = por %p44_p2, %p43_p0  ;;  %p2440_p6 = por %p50_p4, %p49_p3 }
  0x13   : > { %4456 = sst [smem:[#allocation14_spill]] %s2434_s22  ;;  %p273_p8 = scmp.eq.s32.totalorder %s1887_s18, 1 }
  0x14   : > { %p2017_p10 = scmp.lt.s32.totalorder %s2334_s16, 2  ;;  %p2447_p11 = por %p267_p7, %p43_p0 }
  0x15   : > { %p2451_p12 = por %p273_p8, %p49_p3  ;;  %s2456_s27 = sand.u32 1, %s2330_s15  }
  0x16   : > { %s4459_s25 = scalar_select %p2447_p11, 1, 0 }
  0x17   : > { %s4461_s26 = scalar_select %p2451_p12, 1, 0 }
  0x18   : > { %4460 = sst [smem:[#allocation15_spill]] %s4459_s25  ;;  %s4287_s28 = sshll.u32 %s2334_s16, 9 }
  0x19   : > { %4462 = sst [smem:[#allocation16_spill]] %s4461_s26  ;;  %s4286_s29 = sshll.u32 %s2456_s27, 9 }
  0x1a   : > { %s4463_s0 = sld [smem:[#allocation189_spill]]  ;;  %s321_s20 = scalar_lea.vmem [#allocation2], %s4286_s29 }
  0x1b   : > { %s329_s21 = sshll.u32 %s321_s20, 4  ;;  %p2469_p13 = pnand %p2017_p10, %p2436_p5  ;;  %s330_s21 = int_to_ptr.vmem [resolvable:$true] %s329_s21 }
  0x1c   : > { %p1896_p0 = scmp.ge.s32.totalorder %s2334_s16, 1  ;;  %p359_p1 = scmp.lt.s32.totalorder %s2334_s16, 3 }
  0x1d   : > { %s318_s15 = scalar_lea.sflag [#allocation3], %s2456_s27  ;;  %p2208_p3 = pneg %p2469_p13 }
  0x20   : > { %s326_s12 = scalar_lea.hbm %s4463_s0, %s4287_s28 }
  0x21   : > { %s327_s18 = sshll.u32 %s326_s12, 4  ;;  %s2211_s12 = scalar_lea.hbm %s4463_s0, 1024  ;;  %s328_s18 = int_to_ptr.hbm [resolvable:$true] %s327_s18 }
  0x22   : > { %s2204_s19 = sshra.s32 %s328_s18, 4  ;;  %s2205_s19 = int_to_ptr.hbm [resolvable:$true] %s2204_s19 }
  0x23   : > { %s2206_s30 = scalar_lea.hbm %s2205_s19, 512  ;;  %p2212_p5 = scmp.lt.s32.totalorder %s2205_s19, %s4463_s0 }
  0x24   : > { %p2207_p2 = scmp.ne.s32.totalorder %s2205_s19, %s2206_s30  ;;  %p2213_p8 = scmp.lt.s32.totalorder %s2211_s12, %s2206_s30 }
  0x26   : > { %p2209_p4 = pnand %p2208_p3, %p2207_p2  ;;  %p2214_p10 = por %p2213_p8, %p2212_p5 }
  0x28   : > { %p2210_p7 = pneg %p2209_p4 }
  0x2a   : > { %p2215_p9 = pnand %p2214_p10, %p2210_p7 }
  0x2c   : > { %2218 = shalt.err (!%p2215_p9)
}
  0x2d   : > { %s2336_s28 = smov 1024   ;;  %s2337_s26 = smov 64  }
  0x2e   : > { %2009 = dma.hbm_to_vmem [thread:$0]  (!%p2469_p13), %s328_s18, 8192, %s330_s21, %s318_s15, %s2336_s28, %s2336_s28, %s2337_s26  }
  0x2f   : > { %p2493_p2 = pnand %p1896_p0, %p359_p1  ;;  %s4466_s19 = sshll.u32 %s2334_s16, 9 }
  0x30   : > { %s348_s11 = scalar_lea.hbm %s4273_s1, %s4466_s19  ;;  %s4467_s20 = sshll.u32 %s2456_s27, 9 }
  0x31   : > { %s349_s12 = sshll.u32 %s348_s11, 4  ;;  %s343_s0 = scalar_lea.vmem [#allocation5], %s4467_s20  ;;  %s350_s12 = int_to_ptr.hbm [resolvable:$true] %s349_s12 }
  0x32   : > { %s351_s13 = sshll.u32 %s343_s0, 4  ;;  %s340_s25 = scalar_lea.sflag [#allocation6], %s2456_s27  ;;  %s352_s13 = int_to_ptr.vmem [resolvable:$true] %s351_s13 }
  0x33   : > { %s2234_s10 = sshra.s32 %s350_s12, 4  ;;  %s2241_s30 = scalar_lea.hbm %s4273_s1, 1024  ;;  %s2235_s10 = int_to_ptr.hbm [resolvable:$true] %s2234_s10 }
  0x34   : > { %s2236_s15 = scalar_lea.hbm %s2235_s10, 512  ;;  %p2242_p4 = scmp.lt.s32.totalorder %s2235_s10, %s4273_s1 }
  0x35   : > { %p2237_p9 = scmp.ne.s32.totalorder %s2235_s10, %s2236_s15  ;;  %p2243_p7 = scmp.lt.s32.totalorder %s2241_s30, %s2236_s15 }
  0x37   : > { %p2239_p0 = pnand %p2237_p9, %p2208_p3  ;;  %p2244_p5 = por %p2243_p7, %p2242_p4 }
  0x39   : > { %p2240_p1 = pneg %p2239_p0 }
  0x3b   : > { %p2245_p8 = pnand %p2244_p5, %p2240_p1 }
  0x3d   : > { %2248 = shalt.err (!%p2245_p8)
}
  0x3e   : > { %2012 = dma.hbm_to_vmem [thread:$0]  (!%p2469_p13), %s350_s12, 8192, %s352_s13, %s340_s25, %s2336_s28, %s2336_s28, %s2337_s26  }
  0x3f   : > { %363 = sbr.rel (%p2493_p2) target bundleno = 808 (0x328), region = 60 }
  0x44   : > { %s2519_s0 = sand.u32 1, %s2326_s14  }
  0x45   : > { %s2522_s27 = sshll.u32 %s2519_s0, 9  ;;  %s366_s10 = scalar_lea.sflag [#allocation3], %s2519_s0 }
  0x46   : > { %s2526_s11 = scalar_lea.vmem [#allocation2], %s2522_s27 }
  0x47   : > { %2309 = dma.done.wait (%p2440_p6), %s366_s10, 8192  }
  0x48   : > { %2311 = vsyncadd (%p2440_p6), %s366_s10, 4294959104  ;;  %s376_s13 = scalar_lea.sflag [#allocation6], %s2519_s0  ;;  %s2534_s22 = scalar_lea.vmem [#allocation5], %s2522_s27 }
  0x49   : > { %2313 = dma.done.wait (%p2440_p6), %s376_s13, 8192  }
  0x4a   : > { %2315 = vsyncadd (%p2440_p6), %s376_s13, 4294959104  ;;  %v2541_v0 = vld [vmem:[%s2526_s11 + $0x1c0] sm:$0xff]  ;;  %v2544_v1 = vld [vmem:[%s2526_s11 + $0x1c8] sm:$0xff]  ;;  %vm692_vm0 = vcmask 523264   ;;  %vm1045_vm2 = vcmask 130048   ;;  %s3801_s12 = scalar_lea.vmem [#allocation7], %s2522_s27 }
  0x4b   : > { %4468 = vst [vmem:[#allocation17_spill] sm:$0xff] %v2541_v0  ;;  %v2547_v2 = vld [vmem:[%s2526_s11 + $0x1d0] sm:$0xff]  ;;  %v2553_v4 = vld [vmem:[%s2534_s22 + $0x1c0] sm:$0xff]  ;;  %v2556_v5 = vld [vmem:[%s2526_s11 + $0x1d8] sm:$0xff]  ;;  %s1997_s27 = sshll.u32 %s2418_s17, 9  ;;  %s4856_s15 = sld [smem:[#allocation190_spill]] }
  0x4c   : > { %4469 = vst [vmem:[#allocation18_spill] sm:$0xff] %v2544_v1  ;;  %v2550_v3 = vld [vmem:[%s2526_s11 + $0x1f0] sm:$0xff]  ;;  %v2559_v6 = vld [vmem:[%s2534_s22 + $0x1c8] sm:$0xff]  ;;  %v2566_v8 = vadd.f32 %v2553_v4, %v2541_v0  ;;  %v482_v10 = vld [vmem:[%s2526_s11 + $0x1e0] sm:$0xff]  ;;  %s1776_s19 = scalar_lea.sflag [#allocation4], %s2519_s0 }
  0x4d   : > { %4470 = vst [vmem:[#allocation19_spill] sm:$0xff] %v2547_v2  ;;  %v2562_v7 = vld [vmem:[%s2534_s22 + $0x1d0] sm:$0xff]  ;;  %v2572_v11 = vld [vmem:[%s2526_s11 + $0x1e8] sm:$0xff]  ;;  %v2575_v12 = vld [vmem:[%s2534_s22 + $0x1d8] sm:$0xff]  ;;  %v2582_v14 = vadd.f32 %v2559_v6, %v2544_v1 }
  0x4e   : > { %4471 = vst [vmem:[#allocation20_spill] sm:$0xff] %v2550_v3  ;;  %v2578_v13 = vld [vmem:[%s2534_s22 + $0x1f0] sm:$0xff]  ;;  %v2586_v15 = vadd.f32 %v2562_v7, %v2547_v2  ;;  %v2591_v17 = vld [vmem:[%s2526_s11 + $0x1f8] sm:$0xff]  ;;  %v546_v18 = vld [vmem:[%s2534_s22 + $0x1e0] sm:$0xff]  ;;  %707 = vmatpush.msra.mxu0 %v2566_v8  ;;  %v2622_v28 = vadd.f32 %v2575_v12, %v2556_v5 }
  0x4f   : > { %4472 = vst [vmem:[#allocation21_spill] sm:$0xff] %v2553_v4  ;;  %v2595_v19 = vld [vmem:[%s2534_s22 + $0x1e8] sm:$0xff]  ;;  %v2599_v20 = vadd.f32 %v2578_v13, %v2550_v3  ;;  %v2605_v22 = vld [vmem:[%s2534_s22 + $0x1f8] sm:$0xff]  ;;  %v2614_v26 = vld [vmem:[%s2526_s11 + $0x140] sm:$0xff]  ;;  %v970_v30 = vadd.f32 %v2582_v14, %v2566_v8  ;;  %730 = vmatpush.msra.mxu1 %v2582_v14  ;;  %v2642_v35 = vadd.f32 %v546_v18, %v482_v10 }
  0x50   : > { %4473 = vst [vmem:[#allocation22_spill] sm:$0xff] %v2556_v5  ;;  %v2617_v27 = vld [vmem:[%s2526_s11 + $0x148] sm:$0xff]  ;;  %753 = vmatpush.msra.mxu3 %v2586_v15  ;;  %v2629_v31 = vld [vmem:[%s2526_s11 + $0x150] sm:$0xff]  ;;  %v2634_v32 = vld [vmem:[%s2534_s22 + $0x140] sm:$0xff]  ;;  %v2664_v42 = vadd.f32 %v2595_v19, %v2572_v11  ;;  %v2680_v48 = vadd.f32 %v2605_v22, %v2591_v17 }
  0x51   : > { %4474 = vst [vmem:[#allocation23_spill] sm:$0xff] %v2559_v6  ;;  %845 = vmatpush.msra.mxu2 %v2599_v20  ;;  %v2637_v33 = vld [vmem:[%s2534_s22 + $0x148] sm:$0xff]  ;;  %v2640_v34 = vld [vmem:[%s2534_s22 + $0x150] sm:$0xff]  ;;  %v971_v36 = vadd.f32 %v970_v30, %v2586_v15  ;;  %v2646_v37 = vld [vmem:[%s2526_s11 + $0x158] sm:$0xff]  ;;  %v2656_v40 = vadd.f32 %v2634_v32, %v2614_v26  ;;  %s4857_s18 = smov %s4856_s15  ;;  %s1787_s21 = scalar_lea.hbm %s4856_s15, %s1997_s27 }
  0x52   : > { %4475 = vst [vmem:[#allocation24_spill] sm:$0xff] %v2562_v7  ;;  %v2649_v38 = vld [vmem:[%s2526_s11 + $0x168] sm:$0xff]  ;;  %v2652_v39 = vld [vmem:[%s2526_s11 + $0x170] sm:$0xff]  ;;  %v2660_v41 = vadd.f32 %v2637_v33, %v2617_v27  ;;  %v466_v43 = vld [vmem:[%s2526_s11 + $0x160] sm:$0xff]  ;;  %v2688_v51 = vadd.f32 %v2640_v34, %v2629_v31  ;;  %s2284_s25 = scalar_lea.hbm %s4857_s18, 1024 }
  0x53   : > { %4476 = vst [vmem:[#allocation25_spill] sm:$0xff] %v2566_v8  ;;  %v2668_v44 = vld [vmem:[%s2526_s11 + $0x178] sm:$0xff]  ;;  %v2674_v46 = vld [vmem:[%s2534_s22 + $0x168] sm:$0xff]  ;;  %v972_v49 = vadd.f32 %v971_v36, %v2622_v28  ;;  %v2684_v50 = vld [vmem:[%s2534_s22 + $0x170] sm:$0xff] }
  0x54   : > { %4477 = vst [vmem:[#allocation26_spill] sm:$0xff] %v2572_v11  ;;  %v2671_v45 = vld [vmem:[%s2534_s22 + $0x158] sm:$0xff]  ;;  %v2693_v53 = vld [vmem:[%s2526_s11 + $0x180] sm:$0xff]  ;;  %v2696_v54 = vld [vmem:[%s2526_s11 + $0x188] sm:$0xff]  ;;  %v952_v18 = vadd.f32 %v2660_v41, %v2656_v40 }
  0x55   : > { %4478 = vst [vmem:[#allocation27_spill] sm:$0xff] %v2575_v12  ;;  %v530_v55 = vld [vmem:[%s2534_s22 + $0x160] sm:$0xff]  ;;  %v2700_v56 = vld [vmem:[%s2534_s22 + $0x178] sm:$0xff]  ;;  %v2711_v61 = vld [vmem:[%s2526_s11 + $0x190] sm:$0xff]  ;;  %v973_v62 = vadd.f32 %v972_v49, %v2642_v35  ;;  %v2716_v63 = vadd.f32 %v2671_v45, %v2646_v37 }
  0x56   : > { %4479 = vst [vmem:[#allocation28_spill] sm:$0xff] %v2578_v13  ;;  %v2723_v30 = vld [vmem:[%s2526_s11 + $0x198] sm:$0xff]  ;;  %v2726_v36 = vld [vmem:[%s2534_s22 + $0x180] sm:$0xff]  ;;  %v2729_v29 = vld [vmem:[%s2534_s22 + $0x188] sm:$0xff]  ;;  %v2750_v47 = vadd.f32 %v530_v55, %v466_v43  ;;  %v953_v25 = vadd.f32 %v952_v18, %v2688_v51 }
  0x57   : > { %4480 = vst [vmem:[#allocation29_spill] sm:$0xff] %v2582_v14  ;;  %v2732_v49 = vld [vmem:[%s2534_s22 + $0x190] sm:$0xff]  ;;  %v2735_v60 = vld [vmem:[%s2534_s22 + $0x198] sm:$0xff]  ;;  %v2739_v10 = vadd.f32 %v2726_v36, %v2693_v53  ;;  %v2743_v59 = vadd.f32 %v2729_v29, %v2696_v54  ;;  %v974_v52 = vadd.f32 %v973_v62, %v2664_v42  ;;  %v474_v24 = vld [vmem:[%s2526_s11 + $0x1a0] sm:$0xff]  ;;  %v2769_v62 = vadd.f32 %v2674_v46, %v2649_v38 }
  0x58   : > { %4481 = vst [vmem:[#allocation30_spill] sm:$0xff] %v2586_v15  ;;  %v2755_v23 = vld [vmem:[%s2526_s11 + $0x1a8] sm:$0xff]  ;;  %v2758_v21 = vld [vmem:[%s2526_s11 + $0x1b0] sm:$0xff]  ;;  %v2761_v16 = vld [vmem:[%s2526_s11 + $0x1b8] sm:$0xff]  ;;  %v2765_v58 = vadd.f32 %v2732_v49, %v2711_v61  ;;  %v2780_v57 = vadd.f32 %v2735_v60, %v2723_v30 }
  0x59   : > { %4482 = vst [vmem:[#allocation31_spill] sm:$0xff] %v2591_v17  ;;  %v538_v43 = vld [vmem:[%s2534_s22 + $0x1a0] sm:$0xff]  ;;  %v2773_v55 = vld [vmem:[%s2534_s22 + $0x1a8] sm:$0xff]  ;;  %v2776_v18 = vld [vmem:[%s2534_s22 + $0x1b0] sm:$0xff]  ;;  %708 = vmatpush.msra.mxu0 %v2739_v10  ;;  %v975_v9 = vadd.f32 %v974_v52, %v2599_v20  ;;  %v2817_v52 = vadd.f32 %v2684_v50, %v2652_v39  ;;  %731 = vmatpush.msra.mxu1 %v2743_v59 }
  0x5a   : > { %4483 = vst [vmem:[#allocation32_spill] sm:$0xff] %v2595_v19  ;;  %v2796_v17 = vld [vmem:[%s2526_s11 + $0xc8] sm:$0xff]  ;;  %754 = vmatpush.msra.mxu3 %v2765_v58  ;;  %v458_v3 = vld [vmem:[%s2526_s11 + $0x120] sm:$0xff]  ;;  %v2976_v14 = vld [vmem:[%s2534_s22 + $0x130] sm:$0xff] }
  0x5b   : > { %4484 = vst [vmem:[#allocation33_spill] sm:$0xff] %v2599_v20  ;;  %709 = vmatpush.msra.mxu0 %v2656_v40  ;;  %732 = vmatpush.msra.mxu1 %v2660_v41  ;;  %v2937_v20 = vld [vmem:[%s2526_s11 + $0x118] sm:$0xff]  ;;  %v522_v19 = vld [vmem:[%s2534_s22 + $0x120] sm:$0xff]  ;;  %v2973_v11 = vld [vmem:[%s2534_s22 + $0x128] sm:$0xff] }
  0x5c   : > { %4485 = vst [vmem:[#allocation34_spill] sm:$0xff] %v2605_v22  ;;  %v2793_v22 = vld [vmem:[%s2526_s11 + $0xc0] sm:$0xff]  ;;  %755 = vmatpush.msra.mxu3 %v2688_v51  ;;  %v2987_v7 = vld [vmem:[%s2534_s22 + $0x138] sm:$0xff]  ;;  %v2997_v4 = vld [vmem:[%s2526_s11 + $0x88] sm:$0xff] }
  0x5d   : > { %4486 = vst [vmem:[#allocation35_spill] sm:$0xff] %v2614_v26  ;;  %v2994_v1 = vld [vmem:[%s2526_s11 + $0x80] sm:$0xff]  ;;  %v3015_v0 = vld [vmem:[%s2534_s22 + $0x88] sm:$0xff]  ;;  %v3027_v2 = vld [vmem:[%s2526_s11 + $0x98] sm:$0xff] }
  0x5e   : > { %4487 = vst [vmem:[#allocation36_spill] sm:$0xff] %v2617_v27  ;;  %v2923_v27 = vld [vmem:[%s2534_s22 + $0x110] sm:$0xff] }
  0x5f   : > { %4488 = vst [vmem:[#allocation37_spill] sm:$0xff] %v2622_v28 }
  0x60   : > { %4489 = vst [vmem:[#allocation38_spill] sm:$0xff] %v2629_v31  ;;  %v2901_v31 = vld [vmem:[%s2526_s11 + $0x108] sm:$0xff] }
  0x61   : > { %4490 = vst [vmem:[#allocation39_spill] sm:$0xff] %v2634_v32 }
  0x62   : > { %4491 = vst [vmem:[#allocation40_spill] sm:$0xff] %v2637_v33  ;;  %v2920_v33 = vld [vmem:[%s2534_s22 + $0x108] sm:$0xff] }
  0x63   : > { %4492 = vst [vmem:[#allocation41_spill] sm:$0xff] %v2640_v34 }
  0x64   : > { %4493 = vst [vmem:[#allocation42_spill] sm:$0xff] %v2642_v35 }
  0x65   : > { %4494 = vst [vmem:[#allocation43_spill] sm:$0xff] %v2646_v37 }
  0x66   : > { %4495 = vst [vmem:[#allocation44_spill] sm:$0xff] %v2649_v38  ;;  %v2840_v38 = vld [vmem:[%s2526_s11 + $0xf0] sm:$0xff] }
  0x67   : > { %4496 = vst [vmem:[#allocation45_spill] sm:$0xff] %v2652_v39  ;;  %v2837_v39 = vld [vmem:[%s2526_s11 + $0xe8] sm:$0xff] }
  0x68   : > { %4497 = vst [vmem:[#allocation46_spill] sm:$0xff] %v2656_v40 }
  0x69   : > { %4498 = vst [vmem:[#allocation47_spill] sm:$0xff] %v2660_v41  ;;  %v2917_v41 = vld [vmem:[%s2534_s22 + $0x100] sm:$0xff] }
  0x6a   : > { %4499 = vst [vmem:[#allocation48_spill] sm:$0xff] %v2664_v42 }
  0x6b   : > { %4500 = vst [vmem:[#allocation49_spill] sm:$0xff] %v2668_v44 }
  0x6c   : > { %4501 = vst [vmem:[#allocation50_spill] sm:$0xff] %v2671_v45 }
  0x6d   : > { %4502 = vst [vmem:[#allocation51_spill] sm:$0xff] %v2674_v46 }
  0x6e   : > { %4503 = vst [vmem:[#allocation52_spill] sm:$0xff] %v2680_v48 }
  0x6f   : > { %4504 = vst [vmem:[#allocation53_spill] sm:$0xff] %v2684_v50 }
  0x70   : > { %4505 = vst [vmem:[#allocation54_spill] sm:$0xff] %v2688_v51  ;;  %v2865_v51 = vld [vmem:[%s2526_s11 + $0xf8] sm:$0xff] }
  0x71   : > { %4506 = vst [vmem:[#allocation55_spill] sm:$0xff] %v2693_v53  ;;  %v961_v53 = vadd.f32 %v2743_v59, %v2739_v10 }
  0x72   : > { %4507 = vst [vmem:[#allocation56_spill] sm:$0xff] %v2696_v54  ;;  %v2786_v54 = vld [vmem:[%s2534_s22 + $0x1b8] sm:$0xff] }
  0x73   : > { %4508 = vst [vmem:[#allocation57_spill] sm:$0xff] %v2700_v56  ;;  %v962_v50 = vadd.f32 %v961_v53, %v2765_v58  ;;  %v2928_v32 = vadd.f32 %v2786_v54, %v2761_v16 }
  0x74   : > { %4509 = vst [vmem:[#allocation58_spill] sm:$0xff] %v2711_v61  ;;  %v2824_v61 = vld [vmem:[%s2534_s22 + $0xc8] sm:$0xff] }
  0x75   : > { %4510 = vst [vmem:[#allocation59_spill] sm:$0xff] %v2716_v63  ;;  %v2848_v46 = vadd.f32 %v2824_v61, %v2796_v17 }
  0x76   : > { %4511 = vst [vmem:[#allocation60_spill] sm:$0xff] %v2723_v30  ;;  %v2811_v30 = vld [vmem:[%s2534_s22 + $0xc0] sm:$0xff] }
  0x77   : > { %4512 = vst [vmem:[#allocation61_spill] sm:$0xff] %v2726_v36  ;;  %v2821_v36 = vld [vmem:[%s2526_s11 + $0xd8] sm:$0xff]  ;;  %v2844_v45 = vadd.f32 %v2811_v30, %v2793_v22 }
  0x78   : > { %4513 = vst [vmem:[#allocation62_spill] sm:$0xff] %v2729_v29  ;;  %v954_v29 = vadd.f32 %v953_v25, %v2716_v63  ;;  %v976_v25 = vadd.f32 %v975_v9, %v2680_v48  ;;  %v2832_v9 = vadd.f32 %v538_v43, %v474_v24  ;;  %v2853_v24 = vadd.f32 %v2700_v56, %v2668_v44  ;;  %v2873_v44 = vld [vmem:[%s2534_s22 + $0xe8] sm:$0xff] }
  0x79   : > { %4514 = vst [vmem:[#allocation63_spill] sm:$0xff] %v2732_v49  ;;  %v2858_v43 = vadd.f32 %v2773_v55, %v2755_v23  ;;  %v963_v56 = vadd.f32 %v962_v50, %v2780_v57  ;;  %v934_v40 = vadd.f32 %v2848_v46, %v2844_v45  ;;  %v2934_v34 = vadd.f32 %v2873_v44, %v2837_v39 }
  0x7a   : > { %4515 = vst [vmem:[#allocation64_spill] sm:$0xff] %v2735_v60  ;;  %v2808_v60 = vld [vmem:[%s2526_s11 + $0xd0] sm:$0xff]  ;;  %v955_v49 = vadd.f32 %v954_v29, %v2750_v47  ;;  %v450_v29 = vld [vmem:[%s2526_s11 + $0xe0] sm:$0xff]  ;;  %977 = vadd.xlane.f32.xlu0 %v976_v25 }
  0x7b   : > { %4516 = vst [vmem:[#allocation65_spill] sm:$0xff] %v2739_v10  ;;  %v2827_v10 = vld [vmem:[%s2534_s22 + $0xd0] sm:$0xff]  ;;  %v514_v25 = vld [vmem:[%s2534_s22 + $0xe0] sm:$0xff] }
  0x7c   : > { %4517 = vst [vmem:[#allocation66_spill] sm:$0xff] %v2743_v59  ;;  %v956_v53 = vadd.f32 %v955_v49, %v2769_v62  ;;  %v2868_v59 = vld [vmem:[%s2534_s22 + $0xd8] sm:$0xff]  ;;  %v2876_v49 = vld [vmem:[%s2534_s22 + $0xf0] sm:$0xff]  ;;  %v2930_v26 = vadd.f32 %v514_v25, %v450_v29 }
  0x7d   : > { %4518 = vst [vmem:[#allocation67_spill] sm:$0xff] %v2750_v47  ;;  %v2910_v37 = vadd.f32 %v2868_v59, %v2821_v36  ;;  %v2947_v29 = vld [vmem:[%s2526_s11 + $0x130] sm:$0xff]  ;;  %v2950_v25 = vld [vmem:[%s2526_s11 + $0x138] sm:$0xff] }
  0x7e   : > { %4519 = vst [vmem:[#allocation68_spill] sm:$0xff] %v2755_v23  ;;  %v957_v50 = vadd.f32 %v956_v53, %v2817_v52  ;;  %v2904_v23 = vld [vmem:[%s2526_s11 + $0x110] sm:$0xff]  ;;  %v964_v53 = vadd.f32 %v963_v56, %v2832_v9 }
  0x7f   : > { %4520 = vst [vmem:[#allocation69_spill] sm:$0xff] %v2758_v21  ;;  %v2980_v12 = vadd.f32 %v2923_v27, %v2904_v23 }
  0x80   : > { %4521 = vst [vmem:[#allocation70_spill] sm:$0xff] %v2761_v16  ;;  %v958_v56 = vadd.f32 %v957_v50, %v2853_v24  ;;  %v965_v13 = vadd.f32 %v964_v53, %v2858_v43  ;;  %v2953_v16 = vld [vmem:[%s2534_s22 + $0x118] sm:$0xff]  ;;  %v2961_v53 = vadd.f32 %v2920_v33, %v2901_v31 }
  0x81   : > { %4522 = vst [vmem:[#allocation71_spill] sm:$0xff] %v2765_v58  ;;  %v2862_v58 = vadd.f32 %v2776_v18, %v2758_v21  ;;  %v2898_v21 = vld [vmem:[%s2526_s11 + $0x100] sm:$0xff]  ;;  %756 = vmatpush.msra.mxu3 %v2980_v12 }
  0x82   : > { %4523 = vst [vmem:[#allocation72_spill] sm:$0xff] %v2769_v62  ;;  %v2957_v15 = vadd.f32 %v2917_v41, %v2898_v21  ;;  %959 = vadd.xlane.f32.xlu1 %v958_v56  ;;  %v3009_v56 = vld [vmem:[%s2526_s11 + $0x90] sm:$0xff]  ;;  %733 = vmatpush.msra.mxu1 %v2961_v53 }
  0x83   : > { %4524 = vst [vmem:[#allocation73_spill] sm:$0xff] %v2773_v55  ;;  %v2879_v55 = vld [vmem:[%s2534_s22 + $0xf8] sm:$0xff]  ;;  %846 = vmatpush.msra.mxu2 %v2862_v58  ;;  %v966_v5 = vadd.f32 %v965_v13, %v2862_v58 }
  0x84   : > { %4525 = vst [vmem:[#allocation74_spill] sm:$0xff] %v2776_v18  ;;  %v2883_v18 = vadd.f32 %v2827_v10, %v2808_v60  ;;  %710 = vmatpush.msra.mxu0 %v2957_v15  ;;  %v943_v6 = vadd.f32 %v2961_v53, %v2957_v15  ;;  %734 = vmatpush.msra.mxu1 %v2848_v46 }
  0x85   : > { %4526 = vst [vmem:[#allocation75_spill] sm:$0xff] %v2780_v57  ;;  %847 = vmatpush.msra.mxu2 %v2817_v52  ;;  %v967_v13 = vadd.f32 %v966_v5, %v2928_v32  ;;  %v3036_v5 = vadd.f32 %v522_v19, %v458_v3  ;;  %v3057_v19 = vadd.f32 %v2976_v14, %v2947_v29 }
  0x86   : > { %4527 = vst [vmem:[#allocation76_spill] sm:$0xff] %v2786_v54  ;;  %v935_v50 = vadd.f32 %v934_v40, %v2883_v18  ;;  %v2944_v54 = vld [vmem:[%s2526_s11 + $0x128] sm:$0xff]  ;;  %v2965_v40 = vadd.f32 %v2876_v49, %v2840_v38  ;;  %711 = vmatpush.msra.mxu0 %v2844_v45  ;;  %757 = vmatpush.msra.mxu3 %v2883_v18 }
  0x87   : > { %4528 = vst [vmem:[#allocation77_spill] sm:$0xff] %v2793_v22  ;;  %968 = vadd.xlane.f32.xlu0 %v967_v13  ;;  %v3076_v13 = vld [vmem:[%s2534_s22 + $0xa8] sm:$0xff]  ;;  %v3108_v22 = vld [vmem:[%s2534_s22 + $0x40] sm:$0xff]  ;;  %848 = vmatpush.msra.mxu2 %v3057_v19 }
  0x88   : > { %4529 = vst [vmem:[#allocation78_spill] sm:$0xff] %v2796_v17  ;;  %v936_v8 = vadd.f32 %v935_v50, %v2910_v37  ;;  %v3022_v50 = vadd.f32 %v2953_v16, %v2937_v20 }
  0x89   : > { %4530 = vst [vmem:[#allocation79_spill] sm:$0xff] %v2808_v60  ;;  %v506_v60 = vld [vmem:[%s2534_s22 + $0xa0] sm:$0xff]  ;;  %849 = vmatpush.msra.mxu2 %v2965_v40 }
  0x8a   : > { %4531 = vst [vmem:[#allocation80_spill] sm:$0xff] %v2811_v30 }
  0x8b   : > { %4532 = vst [vmem:[#allocation81_spill] sm:$0xff] %v2817_v52  ;;  %v2969_v52 = vadd.f32 %v2879_v55, %v2865_v51 }
  0x8c   : > { %4533 = vst [vmem:[#allocation82_spill] sm:$0xff] %v2821_v36  ;;  %v442_v36 = vld [vmem:[%s2526_s11 + $0xa0] sm:$0xff] }
  0x8d   : > { %4534 = vst [vmem:[#allocation83_spill] sm:$0xff] %v2824_v61  ;;  %v3079_v61 = vld [vmem:[%s2534_s22 + $0xb0] sm:$0xff] }
  0x8e   : > { %4535 = vst [vmem:[#allocation84_spill] sm:$0xff] %v2827_v10  ;;  %v3065_v10 = vld [vmem:[%s2526_s11 + $0xb8] sm:$0xff] }
  0x8f   : > { %4536 = vst [vmem:[#allocation85_spill] sm:$0xff] %v2832_v9 }
  0x90   : > { %4537 = vst [vmem:[#allocation86_spill] sm:$0xff] %v2837_v39  ;;  %v3051_v39 = vadd.f32 %v3015_v0, %v2997_v4 }
  0x91   : > { %4538 = vst [vmem:[#allocation87_spill] sm:$0xff] %v2840_v38  ;;  %v3043_v38 = vld [vmem:[%s2526_s11 + $0xa8] sm:$0xff] }
  0x92   : > { %4539 = vst [vmem:[#allocation88_spill] sm:$0xff] %v2844_v45  ;;  %v3062_v45 = vld [vmem:[%s2526_s11 + $0xb0] sm:$0xff]  ;;  %735 = vmatpush.msra.mxu1 %v3051_v39 }
  0x93   : > { %4540 = vst [vmem:[#allocation89_spill] sm:$0xff] %v2848_v46 }
  0x94   : > { %4541 = vst [vmem:[#allocation90_spill] sm:$0xff] %v2853_v24 }
  0x95   : > { %4542 = vst [vmem:[#allocation91_spill] sm:$0xff] %v2858_v43 }
  0x96   : > { %4543 = vst [vmem:[#allocation92_spill] sm:$0xff] %v2862_v58  ;;  %v3012_v58 = vld [vmem:[%s2534_s22 + $0x80] sm:$0xff] }
  0x97   : > { %4544 = vst [vmem:[#allocation93_spill] sm:$0xff] %v2865_v51  ;;  %v3030_v51 = vld [vmem:[%s2534_s22 + $0x90] sm:$0xff] }
  0x98   : > { %4545 = vst [vmem:[#allocation94_spill] sm:$0xff] %v2868_v59  ;;  %v944_v59 = vadd.f32 %v943_v6, %v2980_v12  ;;  %v3082_v6 = vld [vmem:[%s2534_s22 + $0xb8] sm:$0xff] }
  0x99   : > { %4546 = vst [vmem:[#allocation95_spill] sm:$0xff] %v2873_v44  ;;  %v3047_v44 = vadd.f32 %v3012_v58, %v2994_v1  ;;  %v3239_v46 = vadd.f32 %v3082_v6, %v3065_v10 }
  0x9a   : > { %4547 = vst [vmem:[#allocation96_spill] sm:$0xff] %v2876_v49  ;;  %v3033_v49 = vld [vmem:[%s2534_s22 + $0x98] sm:$0xff] }
  0x9b   : > { %4548 = vst [vmem:[#allocation97_spill] sm:$0xff] %v2879_v55  ;;  %v937_v55 = vadd.f32 %v936_v8, %v2930_v26  ;;  %v3040_v8 = vadd.f32 %v2973_v11, %v2944_v54  ;;  %v3086_v17 = vadd.f32 %v3033_v49, %v3027_v2  ;;  %712 = vmatpush.msra.mxu0 %v3047_v44 }
  0x9c   : > { %4549 = vst [vmem:[#allocation98_spill] sm:$0xff] %v2883_v18  ;;  %v3070_v18 = vadd.f32 %v3030_v51, %v3009_v56  ;;  %v925_v30 = vadd.f32 %v3051_v39, %v3047_v44 }
  0x9d   : > { %4550 = vst [vmem:[#allocation99_spill] sm:$0xff] %v2898_v21  ;;  %v938_v3 = vadd.f32 %v937_v55, %v2934_v34  ;;  %v3073_v55 = vld [vmem:[%s2526_s11 + $0x40] sm:$0xff] }
  0x9e   : > { %4551 = vst [vmem:[#allocation100_spill] sm:$0xff] %v2901_v31  ;;  %758 = vmatpush.msra.mxu3 %v3070_v18 }
  0x9f   : > { %4552 = vst [vmem:[#allocation101_spill] sm:$0xff] %v2904_v23  ;;  %v3209_v23 = vld [vmem:[%s2534_s22] sm:$0xff] }
  0xa0   : > { %4553 = vst [vmem:[#allocation102_spill] sm:$0xff] %v2910_v37 }
  0xa1   : > { %4554 = vst [vmem:[#allocation103_spill] sm:$0xff] %v2917_v41 }
  0xa2   : > { %4555 = vst [vmem:[#allocation104_spill] sm:$0xff] %v2920_v33  ;;  %v3215_v33 = vld [vmem:[%s2534_s22 + $0x10] sm:$0xff] }
  0xa3   : > { %4556 = vst [vmem:[#allocation105_spill] sm:$0xff] %v2923_v27 }
  0xa4   : > { %4557 = vst [vmem:[#allocation106_spill] sm:$0xff] %v2928_v32 }
  0xa5   : > { %4558 = vst [vmem:[#allocation107_spill] sm:$0xff] %v2930_v26 }
  0xa6   : > { %4559 = vst [vmem:[#allocation108_spill] sm:$0xff] %v2934_v34 }
  0xa7   : > { %4560 = vst [vmem:[#allocation109_spill] sm:$0xff] %v2937_v20  ;;  %v3198_v20 = vld [vmem:[%s2526_s11 + $0x10] sm:$0xff] }
  0xa8   : > { %4561 = vst [vmem:[#allocation110_spill] sm:$0xff] %v2944_v54 }
  0xa9   : > { %4562 = vst [vmem:[#allocation111_spill] sm:$0xff] %v2947_v29  ;;  %v939_v29 = vadd.f32 %v938_v3, %v2965_v40  ;;  %v3131_v3 = vadd.f32 %v2987_v7, %v2950_v25 }
  0xaa   : > { %4563 = vst [vmem:[#allocation112_spill] sm:$0xff] %v2950_v25  ;;  %v498_v25 = vld [vmem:[%s2534_s22 + $0x60] sm:$0xff] }
  0xab   : > { %4564 = vst [vmem:[#allocation113_spill] sm:$0xff] %v2953_v16  ;;  %v3177_v16 = vld [vmem:[%s2534_s22 + $0x70] sm:$0xff] }
  0xac   : > { %4565 = vst [vmem:[#allocation114_spill] sm:$0xff] %v2957_v15  ;;  %v3195_v15 = vld [vmem:[%s2526_s11 + $0x8] sm:$0xff] }
  0xad   : > { %4566 = vst [vmem:[#allocation115_spill] sm:$0xff] %v2961_v53  ;;  %v3174_v53 = vld [vmem:[%s2534_s22 + $0x68] sm:$0xff] }
  0xae   : > { %4567 = vst [vmem:[#allocation116_spill] sm:$0xff] %v2965_v40 }
  0xaf   : > { %4568 = vst [vmem:[#allocation117_spill] sm:$0xff] %v2969_v52 }
  0xb0   : > { %4569 = vst [vmem:[#allocation118_spill] sm:$0xff] %v2973_v11  ;;  %v3118_v11 = vld [vmem:[%s2534_s22 + $0x48] sm:$0xff] }
  0xb1   : > { %4570 = vst [vmem:[#allocation119_spill] sm:$0xff] %v2976_v14  ;;  %v3121_v14 = vld [vmem:[%s2534_s22 + $0x50] sm:$0xff] }
  0xb2   : > { %4571 = vst [vmem:[#allocation120_spill] sm:$0xff] %v2980_v12  ;;  %v945_v12 = vadd.f32 %v944_v59, %v3022_v50  ;;  %v940_v59 = vadd.f32 %v939_v29, %v2969_v52  ;;  %v3146_v29 = vld [vmem:[%s2526_s11 + $0x70] sm:$0xff] }
  0xb3   : > { %4572 = vst [vmem:[#allocation121_spill] sm:$0xff] %v2987_v7  ;;  %v3149_v7 = vld [vmem:[%s2526_s11 + $0x78] sm:$0xff] }
  0xb4   : > { %4573 = vst [vmem:[#allocation122_spill] sm:$0xff] %v2994_v1  ;;  %v3105_v1 = vld [vmem:[%s2526_s11 + $0x50] sm:$0xff]  ;;  %941 = vadd.xlane.f32.xlu2 %v940_v59  ;;  %v3182_v59 = vld [vmem:[%s2526_s11] sm:$0xff] }
  0xb5   : > { %4574 = vst [vmem:[#allocation123_spill] sm:$0xff] %v2997_v4  ;;  %v3143_v4 = vld [vmem:[%s2526_s11 + $0x68] sm:$0xff]  ;;  %v3233_v31 = vadd.f32 %v3209_v23, %v3182_v59 }
  0xb6   : > { %4575 = vst [vmem:[#allocation124_spill] sm:$0xff] %v3009_v56  ;;  %v926_v56 = vadd.f32 %v925_v30, %v3070_v18  ;;  %v3251_v40 = vadd.f32 %v3174_v53, %v3143_v4 }
  0xb7   : > { %4576 = vst [vmem:[#allocation125_spill] sm:$0xff] %v3012_v58  ;;  %v3102_v58 = vld [vmem:[%s2526_s11 + $0x48] sm:$0xff] }
  0xb8   : > { %4577 = vst [vmem:[#allocation126_spill] sm:$0xff] %v3015_v0  ;;  %v434_v0 = vld [vmem:[%s2526_s11 + $0x60] sm:$0xff]  ;;  %v3157_v54 = vadd.f32 %v3118_v11, %v3102_v58 }
  0xb9   : > { %4578 = vst [vmem:[#allocation127_spill] sm:$0xff] %v3027_v2  ;;  %v946_v2 = vadd.f32 %v945_v12, %v3036_v5  ;;  %v3152_v12 = vld [vmem:[%s2534_s22 + $0x58] sm:$0xff]  ;;  %v3241_v41 = vadd.f32 %v498_v25, %v434_v0  ;;  %v3258_v0 = vld [vmem:[%s2526_s11 + $0x28] sm:$0xff]  ;;  %v3261_v25 = vld [vmem:[%s2526_s11 + $0x30] sm:$0xff] }
  0xba   : > { %4579 = vst [vmem:[#allocation128_spill] sm:$0xff] %v3030_v51  ;;  %v3138_v51 = vadd.f32 %v506_v60, %v442_v36  ;;  %v3161_v60 = vadd.f32 %v3121_v14, %v3105_v1  ;;  %v3167_v36 = vadd.f32 %v3076_v13, %v3043_v38  ;;  %736 = vmatpush.msra.mxu1 %v3157_v54 }
  0xbb   : > { %4580 = vst [vmem:[#allocation129_spill] sm:$0xff] %v3033_v49  ;;  %v3125_v49 = vadd.f32 %v3108_v22, %v3073_v55  ;;  %v947_v30 = vadd.f32 %v946_v2, %v3040_v8  ;;  %v927_v2 = vadd.f32 %v926_v56, %v3086_v17 }
  0xbc   : > { %4581 = vst [vmem:[#allocation130_spill] sm:$0xff] %v3036_v5  ;;  %759 = vmatpush.msra.mxu3 %v3161_v60 }
  0xbd   : > { %4582 = vst [vmem:[#allocation131_spill] sm:$0xff] %v3043_v38  ;;  %713 = vmatpush.msra.mxu0 %v3125_v49  ;;  %v948_v56 = vadd.f32 %v947_v30, %v3057_v19  ;;  %v3212_v38 = vld [vmem:[%s2534_s22 + $0x8] sm:$0xff]  ;;  %v928_v30 = vadd.f32 %v927_v2, %v3138_v51 }
  0xbe   : > { %4583 = vst [vmem:[#allocation132_spill] sm:$0xff] %v3047_v44  ;;  %v3135_v44 = vld [vmem:[%s2526_s11 + $0x58] sm:$0xff]  ;;  %v3245_v21 = vadd.f32 %v3212_v38, %v3195_v15 }
  0xbf   : > { %4584 = vst [vmem:[#allocation133_spill] sm:$0xff] %v3051_v39  ;;  %v3221_v27 = vadd.f32 %v3152_v12, %v3135_v44  ;;  %v949_v2 = vadd.f32 %v948_v56, %v3131_v3  ;;  %714 = vmatpush.msra.mxu0 %v3233_v31 }
  0xc0   : > { %4585 = vst [vmem:[#allocation134_spill] sm:$0xff] %v3057_v19  ;;  %v3229_v19 = vld [vmem:[%s2534_s22 + $0x18] sm:$0xff]  ;;  %737 = vmatpush.msra.mxu1 %v3245_v21 }
  0xc1   : > { %4586 = vst [vmem:[#allocation135_spill] sm:$0xff] %v3062_v45  ;;  %950 = vadd.xlane.f32.xlu1 %v949_v2  ;;  %799 = vmatpush.msrb.mxu0 %v2642_v35  ;;  %v3317_v35 = vadd.f32 %v3177_v16, %v3146_v29 }
  0xc2   : > { %4587 = vst [vmem:[#allocation136_spill] sm:$0xff] %v3065_v10  ;;  %v3272_v10 = vld [vmem:[%s2534_s22 + $0x20] sm:$0xff]  ;;  %822 = vmatpush.msrb.mxu1 %v2664_v42 }
  0xc3   : > { %4588 = vst [vmem:[#allocation137_spill] sm:$0xff] %v3070_v18  ;;  %v3171_v18 = vadd.f32 %v3079_v61, %v3062_v45  ;;  %v916_v45 = vadd.f32 %v3157_v54, %v3125_v49  ;;  %800 = vmatpush.msrb.mxu0 %v2832_v9 }
  0xc4   : > { %4589 = vst [vmem:[#allocation138_spill] sm:$0xff] %v3076_v13  ;;  %v3186_v13 = vld [vmem:[%s2534_s22 + $0x78] sm:$0xff]  ;;  %823 = vmatpush.msrb.mxu1 %v2858_v43 }
  0xc5   : > { %4590 = vst [vmem:[#allocation139_spill] sm:$0xff] %v3079_v61  ;;  %v3226_v61 = vld [vmem:[%s2526_s11 + $0x18] sm:$0xff]  ;;  %v917_v56 = vadd.f32 %v916_v45, %v3161_v60  ;;  %v3275_v45 = vld [vmem:[%s2534_s22 + $0x28] sm:$0xff]  ;;  %801 = vmatpush.msrb.mxu0 %v2750_v47  ;;  %850 = vmatpush.msra.mxu2 %v3171_v18 }
  0xc6   : > { %4591 = vst [vmem:[#allocation140_spill] sm:$0xff] %v3082_v6  ;;  %v3265_v6 = vadd.f32 %v3215_v33, %v3198_v20  ;;  %v3279_v39 = vadd.f32 %v3229_v19, %v3226_v61  ;;  %824 = vmatpush.msrb.mxu1 %v2769_v62 }
  0xc7   : > { %4592 = vst [vmem:[#allocation141_spill] sm:$0xff] %v3105_v1  ;;  %v3293_v1 = vld [vmem:[%s2534_s22 + $0x38] sm:$0xff]  ;;  %802 = vmatpush.msrb.mxu0 %v3036_v5  ;;  %851 = vmatpush.msra.mxu2 %v3317_v35 }
  0xc8   : > { %4593 = vst [vmem:[#allocation142_spill] sm:$0xff] %v3118_v11  ;;  %v907_v11 = vadd.f32 %v3245_v21, %v3233_v31  ;;  %760 = vmatpush.msra.mxu3 %v3265_v6  ;;  %825 = vmatpush.msrb.mxu1 %v3040_v8 }
  0xc9   : > { %4594 = vst [vmem:[#allocation143_spill] sm:$0xff] %v3121_v14  ;;  %v3290_v14 = vld [vmem:[%s2534_s22 + $0x30] sm:$0xff]  ;;  %803 = vmatpush.msrb.mxu0 %v2930_v26 }
  0xca   : > { %4595 = vst [vmem:[#allocation144_spill] sm:$0xff] %v3125_v49  ;;  %v918_v49 = vadd.f32 %v917_v56, %v3221_v27  ;;  %776 = vmatpush.msrb.mxu3 %v2622_v28  ;;  %v908_v56 = vadd.f32 %v907_v11, %v3265_v6  ;;  %826 = vmatpush.msrb.mxu1 %v2934_v34 }
  0xcb   : > { %4596 = vst [vmem:[#allocation145_spill] sm:$0xff] %v3131_v3  ;;  %804 = vmatpush.msrb.mxu0 %v3138_v51 }
  0xcc   : > { %4597 = vst [vmem:[#allocation146_spill] sm:$0xff] %v3135_v44  ;;  %v3255_v44 = vld [vmem:[%s2526_s11 + $0x20] sm:$0xff]  ;;  %v909_v11 = vadd.f32 %v908_v56, %v3279_v39  ;;  %777 = vmatpush.msrb.mxu3 %v2780_v57  ;;  %827 = vmatpush.msrb.mxu1 %v3167_v36 }
  0xcd   : > { %4598 = vst [vmem:[#allocation147_spill] sm:$0xff] %v3138_v51  ;;  %805 = vmatpush.msrb.mxu0 %v3241_v41 }
  0xce   : > { %4599 = vst [vmem:[#allocation148_spill] sm:$0xff] %v3143_v4  ;;  %v3303_v4 = vld [vmem:[%s4274_s2] sm:$0xff]  ;;  %778 = vmatpush.msrb.mxu3 %v2716_v63  ;;  %828 = vmatpush.msrb.mxu1 %v3251_v40 }
  0xcf   : > { %4600 = vst [vmem:[#allocation149_spill] sm:$0xff] %v3152_v12  ;;  %v929_v12 = vadd.f32 %v928_v30, %v3167_v36  ;;  %v3269_v30 = vld [vmem:[%s2526_s11 + $0x38] sm:$0xff]  ;;  %1900 = vmatmul.msk.f32.vlgmr.msra.gmra.mxu0 %vm692_vm0, %v3303_v4  ;;  %1904 = vmatmul.msk.f32.vlgmr.msra.gmra.mxu3 %vm692_vm0, %v3303_v4 }
  0xd0   : > { %4601 = vst [vmem:[#allocation150_spill] sm:$0xff] %v3161_v60  ;;  %1902 = vmatmul.msk.f32.vlgmr.msra.gmra.mxu1 %vm692_vm0, %v3303_v4  ;;  %779 = vmatpush.msrb.mxu3 %v3022_v50 }
  0xd1   : > { %4602 = vst [vmem:[#allocation151_spill] sm:$0xff] %v3174_v53  ;;  %v930_v2 = vadd.f32 %v929_v12, %v3171_v18  ;;  %v3324_v53 = vadd.f32 %v3272_v10, %v3255_v44  ;;  %v3339_v12 = vadd.f32 %v3275_v45, %v3258_v0 }
  0xd2   : > { %4603 = vst [vmem:[#allocation152_spill] sm:$0xff] %v3195_v15  ;;  %780 = vmatpush.msrb.mxu3 %v2910_v37  ;;  %v3450_v37 = vld [vmem:[%s4276_s4 + $0x8] sm:$0xff]  ;;  %v4646_v15 = vld [vmem:[#allocation144_spill] sm:$0xff] }
  0xd3   : > { %4604 = vst [vmem:[#allocation153_spill] sm:$0xff] %v3198_v20  ;;  %v931_v60 = vadd.f32 %v930_v2, %v3239_v46  ;;  %v910_v9 = vadd.f32 %v909_v11, %v3324_v53  ;;  %806 = vmatpush.msrb.mxu0 %v3324_v53  ;;  %829 = vmatpush.msrb.mxu1 %v3339_v12  ;;  %v4643_v20 = vld [vmem:[#allocation141_spill] sm:$0xff] }
  0xd4   : > { %4605 = vst [vmem:[#allocation154_spill] sm:$0xff] %v3212_v38  ;;  %781 = vmatpush.msrb.mxu3 %v3086_v17 }
  0xd5   : > { %4606 = vst [vmem:[#allocation155_spill] sm:$0xff] %v3215_v33  ;;  %932 = vadd.xlane.f32.xlu2 %v931_v60  ;;  %v911_v47 = vadd.f32 %v910_v9, %v3339_v12  ;;  %v680_v9 = vld [vmem:[%s4275_s3] sm:$0xff] }
  0xd6   : > { %4607 = vst [vmem:[#allocation156_spill] sm:$0xff] %v3226_v61  ;;  %782 = vmatpush.msrb.mxu3 %v3221_v27 }
  0xd7   : > { %4608 = vst [vmem:[#allocation157_spill] sm:$0xff] %v3229_v19  ;;  %v919_v19 = vadd.f32 %v918_v49, %v3241_v41  ;;  %v3333_v49 = vadd.f32 %v3186_v13, %v3149_v7 }
  0xd8   : > { %4609 = vst [vmem:[#allocation158_spill] sm:$0xff] %v3233_v31  ;;  %783 = vmatpush.msrb.mxu3 %v3279_v39 }
  0xd9   : > { %4610 = vst [vmem:[#allocation159_spill] sm:$0xff] %v3239_v46  ;;  %v920_v2 = vadd.f32 %v919_v19, %v3251_v40  ;;  %v3349_v19 = vadd.f32 %v3290_v14, %v3261_v25 }
  0xda   : > { %4611 = vst [vmem:[#allocation160_spill] sm:$0xff] %v3245_v21  ;;  %868 = vmatpush.msra.mxu3 %v2680_v48 }
  0xdb   : > { %4612 = vst [vmem:[#allocation161_spill] sm:$0xff] %v3255_v44  ;;  %v921_v60 = vadd.f32 %v920_v2, %v3317_v35  ;;  %v3360_v2 = vadd.f32 %v3293_v1, %v3269_v30  ;;  %v912_v11 = vadd.f32 %v911_v47, %v3349_v19  ;;  %852 = vmatpush.msra.mxu2 %v3349_v19  ;;  %v679_v47 = vld [vmem:[%s4274_s2 + $0x8] sm:$0xff] }
  0xdc   : > { %4613 = vst [vmem:[#allocation162_spill] sm:$0xff] %v3258_v0  ;;  %1912 = vmatmul.msk.f32.vlgmr.msra.gmra.mxu2 %vm692_vm0, %v3303_v4  ;;  %869 = vmatpush.msra.mxu3 %v2928_v32 }
  0xdd   : > { %4614 = vst [vmem:[#allocation163_spill] sm:$0xff] %v3261_v25  ;;  %v922_v56 = vadd.f32 %v921_v60, %v3333_v49  ;;  %v913_v60 = vadd.f32 %v912_v11, %v3360_v2  ;;  %1901 = vmatmul.msk.f32.gmra.mxu0 %vm692_vm0, %v679_v47  ;;  %1905 = vmatmul.msk.f32.gmra.mxu3 %vm692_vm0, %v679_v47  ;;  %v2339_v11 = vmov 1024.0  }
  0xde   : > { %4615 = vst [vmem:[#allocation164_spill] sm:$0xff] %v3265_v6  ;;  %870 = vmatpush.msra.mxu3 %v2853_v24  ;;  %1903 = vmatmul.msk.f32.gmra.mxu1 %vm692_vm0, %v679_v47  ;;  %2060 = vrcp.f32 %v2339_v11 }
  0xdf   : > { %4616 = vst [vmem:[#allocation165_spill] sm:$0xff] %v3269_v30  ;;  %923 = vadd.xlane.f32.xlu0 %v922_v56  ;;  %914 = vadd.xlane.f32.xlu1 %v913_v60  ;;  %v2338_v56 = vmov 0  }
  0xe0   : > { %4617 = vst [vmem:[#allocation166_spill] sm:$0xff] %v3272_v10  ;;  %871 = vmatpush.msra.mxu3 %v3131_v3  ;;  %2058 = vset.pattern.permute.xlu0 %v2338_v56 }
  0xe1   : > { %4618 = vst [vmem:[#allocation167_spill] sm:$0xff] %v3275_v45  ;;  %2057 = vset.pattern.permute.xlu2 %v2338_v56  ;;  %2059 = vset.pattern.permute.xlu1 %v2338_v56 }
  0xe2   : > { %4619 = vst [vmem:[#allocation168_spill] sm:$0xff] %v3279_v39  ;;  %872 = vmatpush.msra.mxu3 %v2969_v52 }
  0xe3   : > { %4620 = vst [vmem:[#allocation169_spill] sm:$0xff] %v3290_v14 }
  0xe4   : > { %4621 = vst [vmem:[#allocation170_spill] sm:$0xff] %v3293_v1  ;;  %873 = vmatpush.msra.mxu3 %v3239_v46  ;;  %1913 = vmatmul.msk.f32.gmra.mxu2 %vm692_vm0, %v679_v47  ;;  %v2061_v60 = vpop.eup %2060  ;;  %v4651_v46 = vld [vmem:[#allocation151_spill] sm:$0xff] }
  0xe5   : > { %4622 = vst [vmem:[#allocation171_spill] sm:$0xff] %v3324_v53  ;;  %1908 = vmatmul.msk.f32.vlgmr.msrb.gmra.mxu0 %vm692_vm0, %v3303_v4  ;;  %1906 = vmatmul.msk.f32.vlgmr.msrb.gmra.mxu3 %vm692_vm0, %v3303_v4  ;;  %vm984_vm1 = vweird.f32 %v2061_v60 }
  0xe6   : > { %4623 = vst [vmem:[#allocation172_spill] sm:$0xff] %v3339_v12  ;;  %874 = vmatpush.msra.mxu3 %v3333_v49  ;;  %1910 = vmatmul.msk.f32.vlgmr.msrb.gmra.mxu1 %vm692_vm0, %v3303_v4 }
  0xe7   : > { %4624 = vst [vmem:[#allocation173_spill] sm:$0xff] %v3349_v19 }
  0xe8   : > { %4625 = vst [vmem:[#allocation174_spill] sm:$0xff] %v3360_v2  ;;  %875 = vmatpush.msra.mxu3 %v3360_v2 }
  0xed   : > { %1909 = vmatmul.msk.f32.gmra.mxu0 %vm692_vm0, %v679_v47  ;;  %1907 = vmatmul.msk.f32.gmra.mxu3 %vm692_vm0, %v679_v47  ;;  %v978_v57 = vpop.xlane.xlu0 %977 }
  0xee   : > { %1911 = vmatmul.msk.f32.gmra.mxu1 %vm692_vm0, %v679_v47 }
  0xf3   : > { %684 = vperm.xlu0 %2058, %v680_v9   ;;  %v980_v9 = vmul.f32 1024.0, %v2061_v60 }
  0xf5   : > { %v981_v32 = vsub.f32 1.0, %v980_v9  ;;  %1914 = vmatmul.msk.f32.vlgmr.msra.gmra.mxu3 %vm692_vm0, %v3303_v4  ;;  %v960_v5 = vpop.xlane.xlu1 %959 }
  0xf7   : > { %v982_v11 = vmul.f32 %v2061_v60, %v981_v32  ;;  %v681_v32 = vld [vmem:[%s4275_s3 + $0x8] sm:$0xff] }
  0xf8   : > { %689 = vperm.xlu2 %2057, %v681_v32  }
  0xf9   : > { %v983_v56 = vadd.f32 %v2061_v60, %v982_v11 }
  0xfa   : > { %v969_v9 = vpop.xlane.xlu0 %968 }
  0xfb   : > { %v985_v43 = vsel %vm984_vm1, %v2061_v60, %v983_v56 }
  0xfc   : > { %v993_v48 = vmul.f32 %v985_v43, %v978_v57  ;;  %v992_v24 = vmul.f32 %v985_v43, %v969_v9  ;;  %v991_v62 = vmul.f32 %v985_v43, %v960_v5 }
  0xfd   : > { %1915 = vmatmul.msk.f32.gmra.mxu3 %vm692_vm0, %v679_v47 }
  0xfe   : > { %1012 = vmatpush.msra.mxu0 %v993_v48 }
 0x100   : > { %1013 = vmatpush.msra.mxu0 %v992_v24 }
 0x102   : > { %1014 = vmatpush.msra.mxu0 %v991_v62  ;;  %v994_v62 = vld [vmem:[%s4278_s6] sm:$0xff] }
 0x127   : > { %v942_v63 = vpop.xlane.xlu2 %941 }
 0x128   : > { %v989_v60 = vmul.f32 %v985_v43, %v942_v63  ;;  %v995_v63 = vld [vmem:[%s4278_s6 + $0x8] sm:$0xff] }
 0x134   : > { %v951_v11 = vpop.xlane.xlu1 %950 }
 0x135   : > { %v990_v4 = vmul.f32 %v985_v43, %v951_v11 }
 0x137   : > { %1015 = vmatpush.msra.mxu0 %v990_v4 }
 0x139   : > { %1016 = vmatpush.msra.mxu0 %v989_v60 }
 0x148   : > { %v933_v57 = vpop.xlane.xlu2 %932 }
 0x149   : > { %v988_v48 = vmul.f32 %v985_v43, %v933_v57 }
 0x14b   : > { %1017 = vmatpush.msra.mxu0 %v988_v48 }
 0x152   : > { %v924_v47 = vpop.xlane.xlu0 %923  ;;  %v915_v5 = vpop.xlane.xlu1 %914 }
 0x153   : > { %v987_v56 = vmul.f32 %v985_v43, %v924_v47  ;;  %v986_v24 = vmul.f32 %v985_v43, %v915_v5  ;;  %v762_v9 = vpop.f32.mrf.mxu3  ;;  %v3429_v4 = vpop.permute.xlu2 %689 }
 0x154   : > { %v716_v47 = vpop.f32.mrf.mxu0 }
 0x155   : > { %1018 = vmatpush.msra.mxu0 %v987_v56  ;;  %v739_v56 = vpop.f32.mrf.mxu1 }
 0x157   : > { %1019 = vmatpush.msra.mxu0 %v986_v24 }
 0x158   : > { %1916 = vmatmul.msk.f32.vlgmr.msra.gmra.mxu0 %vm692_vm0, %v994_v62 }
 0x15c   : > { %v719_v5 = vpop.f32.mrf.mxu0 }
 0x15d   : > { %v742_v62 = vpop.f32.mrf.mxu1 }
 0x160   : > { %1917 = vmatmul.msk.f32.gmra.mxu0 %vm692_vm0, %v995_v63  ;;  %v765_v43 = vpop.f32.mrf.mxu3  ;;  %v743_v63 = vadd.f32 %v742_v62, %v3429_v4 }
 0x161   : > { %v766_v60 = vadd.f32 %v765_v43, %v3429_v4  ;;  %v854_v43 = vpop.f32.mrf.mxu2 }
 0x162   : > { %v892_v42 = vmax.f32 %v743_v63, 0.0 }
 0x163   : > { %v893_v48 = vmax.f32 %v766_v60, 0.0 }
 0x164   : > { %1246 = vmatpush.msrb.mxu3 %v892_v42  ;;  %v808_v28 = vpop.f32.mrf.mxu0 }
 0x165   : > { %v3426_v32 = vpop.permute.xlu0 %684  ;;  %1287 = vmatpush.msrb.mxu0 %v893_v48  ;;  %v831_v52 = vpop.f32.mrf.mxu1 }
 0x166   : > { %v763_v11 = vadd.f32 %v762_v9, %v3426_v32  ;;  %v740_v24 = vadd.f32 %v739_v56, %v3426_v32  ;;  %v855_v48 = vadd.f32 %v854_v43, %v3426_v32  ;;  %v3439_v56 = vld [vmem:[%s4276_s4] sm:$0xff]  ;;  %v717_v12 = vadd.f32 %v716_v47, %v3426_v32 }
 0x167   : > { %v809_v47 = vadd.f32 %v808_v28, %v3426_v32  ;;  %v1030_v28 = vld [vmem:[%s4280_s8 + $0x8] sm:$0xff] }
 0x168   : > { %v885_v57 = vmax.f32 %v763_v11, 0.0  ;;  %v884_v26 = vmax.f32 %v740_v24, 0.0  ;;  %v785_v9 = vpop.f32.mrf.mxu3  ;;  %v889_v63 = vmax.f32 %v855_v48, 0.0  ;;  %v3459_v48 = vld [vmem:[%s4276_s4 + $0x10] sm:$0xff] }
 0x169   : > { %v857_v42 = vpop.f32.mrf.mxu2  ;;  %v786_v3 = vadd.f32 %v785_v9, %v3426_v32 }
 0x16a   : > { %1288 = vmatpush.msrb.mxu0 %v885_v57  ;;  %1247 = vmatpush.msrb.mxu3 %v884_v26  ;;  %v832_v57 = vadd.f32 %v831_v52, %v3426_v32  ;;  %v858_v52 = vadd.f32 %v857_v42, %v3429_v4 }
 0x16b   : > { %1934 = vmatmul.msk.f32.vlgmr.msrb.gmra.mxu3 %vm1045_vm2, %v3439_v56  ;;  %1942 = vmatmul.msk.f32.vlgmr.msrb.gmra.mxu0 %vm1045_vm2, %v3439_v56 }
 0x16c   : > { %v811_v60 = vpop.f32.mrf.mxu0  ;;  %v888_v62 = vmax.f32 %v832_v57, 0.0  ;;  %v897_v34 = vmax.f32 %v858_v52, 0.0 }
 0x16d   : > { %v834_v26 = vpop.f32.mrf.mxu1 }
 0x16e   : > { %v835_v24 = vadd.f32 %v834_v26, %v3429_v4  ;;  %1451 = vmatpush.msra.mxu0 %v897_v34  ;;  %v996_v34 = vld [vmem:[%s4279_s7] sm:$0xff]  ;;  %v997_v26 = vld [vmem:[%s4279_s7 + $0x8] sm:$0xff] }
 0x170   : > { %v788_v11 = vpop.f32.mrf.mxu3  ;;  %v896_v43 = vmax.f32 %v835_v24, 0.0  ;;  %1452 = vmatpush.msra.mxu0 %v889_v63 }
 0x171   : > { %v789_v52 = vadd.f32 %v788_v11, %v3429_v4  ;;  %v1032_v11 = vld [vmem:[%s4280_s8 + $0x18] sm:$0xff] }
 0x172   : > { %1410 = vmatpush.msra.mxu3 %v896_v43  ;;  %v720_v43 = vadd.f32 %v719_v5, %v3429_v4  ;;  %v812_v5 = vadd.f32 %v811_v60, %v3429_v4  ;;  %v1035_v60 = vld [vmem:[%s4280_s8 + $0x30] sm:$0xff] }
 0x173   : > { %1935 = vmatmul.msk.f32.gmra.mxu3 %vm1045_vm2, %v3450_v37  ;;  %1943 = vmatmul.msk.f32.gmra.mxu0 %vm1045_vm2, %v3450_v37  ;;  %v894_v30 = vmax.f32 %v789_v52, 0.0  ;;  %v3536_v52 = vld [vmem:[%s4276_s4 + $0x30] sm:$0xff] }
 0x174   : > { %1411 = vmatpush.msra.mxu3 %v888_v62 }
 0x178   : > { %v877_v51 = vpop.f32.mrf.mxu3 }
 0x179   : > { %v878_v9 = vadd.f32 %v877_v51, %v3426_v32  ;;  %v895_v51 = vmax.f32 %v812_v5, 0.0  ;;  %v3522_v32 = vld [vmem:[%s4276_s4 + $0x28] sm:$0xff] }
 0x17b   : > { %1936 = vmatmul.msk.f32.gmra.mxu3 %vm1045_vm2, %v3459_v48  ;;  %1944 = vmatmul.msk.f32.gmra.mxu0 %vm1045_vm2, %v3459_v48 }
 0x180   : > { %v880_v63 = vpop.f32.mrf.mxu3 }
 0x181   : > { %v881_v19 = vadd.f32 %v880_v63, %v3429_v4  ;;  %v890_v4 = vmax.f32 %v878_v9, 0.0  ;;  %v3551_v63 = vld [vmem:[%s4276_s4 + $0x38] sm:$0xff] }
 0x1d5   : > { %v1021_v57 = vpop.f32.mrf.mxu0 }
 0x1d6   : > { %v1022_v24 = vadd.f32 %v1021_v57, %v996_v34  ;;  %v1029_v57 = vld [vmem:[%s4280_s8] sm:$0xff]  ;;  %v891_v34 = vmax.f32 %v720_v43, 0.0 }
 0x1d8   : > { %v1027_v1 = vmax.f32 %v1022_v24, 0.0  ;;  %v883_v24 = vmax.f32 %v717_v12, 0.0  ;;  %v1031_v12 = vld [vmem:[%s4280_s8 + $0x10] sm:$0xff] }
 0x1dd   : > { %v1024_v42 = vpop.f32.mrf.mxu0 }
 0x1de   : > { %v1025_v62 = vadd.f32 %v1024_v42, %v997_v26  ;;  %v886_v26 = vmax.f32 %v786_v3, 0.0  ;;  %v898_v42 = vmax.f32 %v881_v19, 0.0  ;;  %v1033_v3 = vld [vmem:[%s4280_s8 + $0x20] sm:$0xff]  ;;  %v1034_v19 = vld [vmem:[%s4280_s8 + $0x28] sm:$0xff] }
 0x1e0   : > { %v1028_v2 = vmax.f32 %v1025_v62, 0.0  ;;  %v1036_v62 = vld [vmem:[%s4280_s8 + $0x38] sm:$0xff] }
 0x1e2   : > { %1084 = vmatpush.msra.mxu1 %v1028_v2  ;;  %1998 = vmatpush.msrb.mxu2 %v1028_v2  ;;  %v3487_v2 = vld [vmem:[%s4276_s4 + $0x18] sm:$0xff] }
 0x1e3   : > { %1937 = vmatmul.msk.f32.gmra.mxu3 %vm1045_vm2, %v3487_v2  ;;  %1945 = vmatmul.msk.f32.gmra.mxu0 %vm1045_vm2, %v3487_v2 }
 0x1e4   : > { %1085 = vmatpush.msra.mxu1 %v1027_v1  ;;  %1999 = vmatpush.msrb.mxu2 %v1027_v1  ;;  %v887_v1 = vmax.f32 %v809_v47, 0.0 }
 0x1e5   : > { %1918 = vmatmul.msk.f32.vlgmr.msra.gmra.mxu1 %vm1045_vm2, %v1029_v57  ;;  %1921 = vmatmul.msk.f32.vlgmr.msrb.gmra.mxu2 %vm1045_vm2, %v1032_v11 }
 0x1e6   : > { %1205 = vmatpush.msra.mxu2 %v891_v34  ;;  %1328 = vmatpush.msrb.mxu1 %v894_v30  ;;  %v3505_v30 = vld [vmem:[%s4276_s4 + $0x20] sm:$0xff] }
 0x1e8   : > { %1206 = vmatpush.msra.mxu2 %v883_v24  ;;  %1329 = vmatpush.msrb.mxu1 %v886_v26  ;;  %v3634_v57 = vpop.f32.mrf.mxu0  ;;  %v1040_v26 = vld [vmem:[%s4281_s9 + $0x18] sm:$0xff] }
 0x1ea   : > { %1369 = vmatpush.msrb.mxu2 %v895_v51  ;;  %1492 = vmatpush.msra.mxu1 %v898_v42  ;;  %v1038_v42 = vld [vmem:[%s4281_s9 + $0x8] sm:$0xff] }
 0x1eb   : > { %1938 = vmatmul.msk.f32.gmra.mxu3 %vm1045_vm2, %v3505_v30  ;;  %1946 = vmatmul.msk.f32.gmra.mxu0 %vm1045_vm2, %v3505_v30 }
 0x1ec   : > { %1370 = vmatpush.msrb.mxu2 %v887_v1  ;;  %1493 = vmatpush.msra.mxu1 %v890_v4  ;;  %v1112_v4 = vld [vmem:[%s4277_s5 + $0x8] sm:$0xff] }
 0x1ed   : > { %1919 = vmatmul.msk.f32.gmra.mxu1 %vm1045_vm2, %v1030_v28  ;;  %1922 = vmatmul.msk.f32.gmra.mxu2 %vm1045_vm2, %v1033_v3 }
 0x1ee   : > { %v3632_v43 = vpop.f32.mrf.mxu3 }
 0x1f3   : > { %1939 = vmatmul.msk.f32.gmra.mxu3 %vm1045_vm2, %v3522_v32  ;;  %1947 = vmatmul.msk.f32.gmra.mxu0 %vm1045_vm2, %v3522_v32 }
 0x1f5   : > { %1920 = vmatmul.msk.f32.gmra.mxu1 %vm1045_vm2, %v1031_v12  ;;  %1923 = vmatmul.msk.f32.gmra.mxu2 %vm1045_vm2, %v1034_v19  ;;  %v1041_v12 = vld [vmem:[%s4281_s9 + $0x20] sm:$0xff] }
 0x1f6   : > { %v3646_v9 = vpop.f32.mrf.mxu3 }
 0x1fb   : > { %1940 = vmatmul.msk.f32.gmra.mxu3 %vm1045_vm2, %v3536_v52  ;;  %1948 = vmatmul.msk.f32.gmra.mxu0 %vm1045_vm2, %v3536_v52 }
 0x1fd   : > { %1924 = vmatmul.msk.f32.gmra.mxu2 %vm1045_vm2, %v1035_v60  ;;  %1950 = vmatmul.msk.f32.vlgmr.msrb.gmra.mxu1 %vm1045_vm2, %v3439_v56 }
 0x1fe   : > { %v3673_v19 = vpop.f32.mrf.mxu3 }
 0x203   : > { %1941 = vmatmul.msk.f32.gmra.mxu3 %vm1045_vm2, %v3551_v63  ;;  %1949 = vmatmul.msk.f32.gmra.mxu0 %vm1045_vm2, %v3551_v63 }
 0x205   : > { %1925 = vmatmul.msk.f32.gmra.mxu2 %vm1045_vm2, %v1036_v62  ;;  %1951 = vmatmul.msk.f32.gmra.mxu1 %vm1045_vm2, %v3450_v37 }
 0x20b   : > { %1966 = vmatmul.msk.f32.vlgmr.msra.gmra.mxu3 %vm1045_vm2, %v3439_v56  ;;  %1974 = vmatmul.msk.f32.vlgmr.msra.gmra.mxu0 %vm1045_vm2, %v3439_v56 }
 0x20d   : > { %1926 = vmatmul.msk.f32.vlgmr.msra.gmra.mxu2 %vm1045_vm2, %v3439_v56  ;;  %1952 = vmatmul.msk.f32.gmra.mxu1 %vm1045_vm2, %v3459_v48 }
 0x213   : > { %1967 = vmatmul.msk.f32.gmra.mxu3 %vm1045_vm2, %v3450_v37  ;;  %1975 = vmatmul.msk.f32.gmra.mxu0 %vm1045_vm2, %v3450_v37 }
 0x215   : > { %1927 = vmatmul.msk.f32.gmra.mxu2 %vm1045_vm2, %v3450_v37  ;;  %1953 = vmatmul.msk.f32.gmra.mxu1 %vm1045_vm2, %v3487_v2 }
 0x21b   : > { %1968 = vmatmul.msk.f32.gmra.mxu3 %vm1045_vm2, %v3459_v48  ;;  %1976 = vmatmul.msk.f32.gmra.mxu0 %vm1045_vm2, %v3459_v48 }
 0x21d   : > { %1928 = vmatmul.msk.f32.gmra.mxu2 %vm1045_vm2, %v3459_v48  ;;  %1954 = vmatmul.msk.f32.gmra.mxu1 %vm1045_vm2, %v3505_v30 }
 0x223   : > { %1969 = vmatmul.msk.f32.gmra.mxu3 %vm1045_vm2, %v3487_v2  ;;  %1977 = vmatmul.msk.f32.gmra.mxu0 %vm1045_vm2, %v3487_v2 }
 0x225   : > { %1929 = vmatmul.msk.f32.gmra.mxu2 %vm1045_vm2, %v3487_v2  ;;  %1955 = vmatmul.msk.f32.gmra.mxu1 %vm1045_vm2, %v3522_v32 }
 0x22b   : > { %1970 = vmatmul.msk.f32.gmra.mxu3 %vm1045_vm2, %v3505_v30  ;;  %1978 = vmatmul.msk.f32.gmra.mxu0 %vm1045_vm2, %v3505_v30 }
 0x22d   : > { %1930 = vmatmul.msk.f32.gmra.mxu2 %vm1045_vm2, %v3505_v30  ;;  %1956 = vmatmul.msk.f32.gmra.mxu1 %vm1045_vm2, %v3536_v52 }
 0x233   : > { %1971 = vmatmul.msk.f32.gmra.mxu3 %vm1045_vm2, %v3522_v32  ;;  %1979 = vmatmul.msk.f32.gmra.mxu0 %vm1045_vm2, %v3522_v32 }
 0x235   : > { %1931 = vmatmul.msk.f32.gmra.mxu2 %vm1045_vm2, %v3522_v32  ;;  %1957 = vmatmul.msk.f32.gmra.mxu1 %vm1045_vm2, %v3551_v63 }
 0x23b   : > { %1972 = vmatmul.msk.f32.gmra.mxu3 %vm1045_vm2, %v3536_v52  ;;  %1980 = vmatmul.msk.f32.gmra.mxu0 %vm1045_vm2, %v3536_v52 }
 0x23d   : > { %1932 = vmatmul.msk.f32.gmra.mxu2 %vm1045_vm2, %v3536_v52  ;;  %1982 = vmatmul.msk.f32.vlgmr.msra.gmra.mxu1 %vm1045_vm2, %v3439_v56 }
 0x243   : > { %1973 = vmatmul.msk.f32.gmra.mxu3 %vm1045_vm2, %v3551_v63  ;;  %1981 = vmatmul.msk.f32.gmra.mxu0 %vm1045_vm2, %v3551_v63 }
 0x245   : > { %1933 = vmatmul.msk.f32.gmra.mxu2 %vm1045_vm2, %v3551_v63  ;;  %1983 = vmatmul.msk.f32.gmra.mxu1 %vm1045_vm2, %v3450_v37 }
 0x24d   : > { %1958 = vmatmul.msk.f32.vlgmr.msrb.gmra.mxu2 %vm1045_vm2, %v3439_v56  ;;  %1984 = vmatmul.msk.f32.gmra.mxu1 %vm1045_vm2, %v3459_v48  ;;  %v1037_v56 = vld [vmem:[%s4281_s9] sm:$0xff] }
 0x255   : > { %1959 = vmatmul.msk.f32.gmra.mxu2 %vm1045_vm2, %v3450_v37  ;;  %1985 = vmatmul.msk.f32.gmra.mxu1 %vm1045_vm2, %v3487_v2  ;;  %v1111_v37 = vld [vmem:[%s4277_s5] sm:$0xff] }
 0x25d   : > { %1960 = vmatmul.msk.f32.gmra.mxu2 %vm1045_vm2, %v3459_v48  ;;  %1986 = vmatmul.msk.f32.gmra.mxu1 %vm1045_vm2, %v3505_v30  ;;  %v3652_v48 = vpop.f32.mrf.mxu0 }
 0x262   : > { %v1087_v11 = vpop.f32.mrf.mxu1 }
 0x263   : > { %v1088_v5 = vadd.f32 %v1087_v11, %v1037_v56  ;;  %v1115_v11 = vld [vmem:[%s4277_s5 + $0x20] sm:$0xff] }
 0x265   : > { %v1119_v34 = vadd.f32 %v1111_v37, %v1088_v5  ;;  %1961 = vmatmul.msk.f32.gmra.mxu2 %vm1045_vm2, %v3487_v2  ;;  %1987 = vmatmul.msk.f32.gmra.mxu1 %vm1045_vm2, %v3522_v32  ;;  %v1114_v2 = vld [vmem:[%s4277_s5 + $0x18] sm:$0xff]  ;;  %v3675_v60 = vpop.f32.mrf.mxu0  ;;  %v1039_v37 = vld [vmem:[%s4281_s9 + $0x10] sm:$0xff] }
 0x267   : > { %1129 = vperm.xlu1 %2059, %v1119_v34   ;;  %v1042_v34 = vld [vmem:[%s4281_s9 + $0x28] sm:$0xff] }
 0x268   : > { %v1096_v47 = vpop.f32.mrf.mxu2 }
 0x269   : > { %v1097_v24 = vadd.f32 %v1096_v47, %v1040_v26  ;;  %v1113_v47 = vld [vmem:[%s4277_s5 + $0x10] sm:$0xff] }
 0x26a   : > { %v1090_v51 = vpop.f32.mrf.mxu1 }
 0x26b   : > { %v1091_v1 = vadd.f32 %v1090_v51, %v1038_v42  ;;  %v1122_v28 = vadd.f32 %v1114_v2, %v1097_v24  ;;  %v1116_v24 = vld [vmem:[%s4277_s5 + $0x28] sm:$0xff]  ;;  %v3696_v2 = vpop.f32.mrf.mxu3 }
 0x26d   : > { %v1120_v3 = vadd.f32 %v1112_v4, %v1091_v1  ;;  %1962 = vmatmul.msk.f32.gmra.mxu2 %vm1045_vm2, %v3505_v30  ;;  %1988 = vmatmul.msk.f32.gmra.mxu1 %vm1045_vm2, %v3536_v52  ;;  %v3698_v51 = vpop.f32.mrf.mxu0 }
 0x26f   : > { %1134 = vperm.xlu2 %2057, %v1120_v3   ;;  %1144 = vperm.xlu1 %2059, %v1122_v28   ;;  %v1043_v3 = vld [vmem:[%s4281_s9 + $0x30] sm:$0xff] }
 0x270   : > { %v1099_v62 = vpop.f32.mrf.mxu2 }
 0x271   : > { %v1100_v56 = vadd.f32 %v1099_v62, %v1041_v12  ;;  %v1117_v62 = vld [vmem:[%s4277_s5 + $0x30] sm:$0xff] }
 0x272   : > { %v1093_v30 = vpop.f32.mrf.mxu1 }
 0x273   : > { %v1123_v5 = vadd.f32 %v1115_v11, %v1100_v56  ;;  %v1094_v26 = vadd.f32 %v1093_v30, %v1039_v37  ;;  %v1261_v30 = vpop.f32.mrf.mxu3 }
 0x275   : > { %1963 = vmatmul.msk.f32.gmra.mxu2 %vm1045_vm2, %v3522_v32  ;;  %1989 = vmatmul.msk.f32.gmra.mxu1 %vm1045_vm2, %v3551_v63  ;;  %v1121_v1 = vadd.f32 %v1113_v47, %v1094_v26  ;;  %v1118_v26 = vld [vmem:[%s4277_s5 + $0x38] sm:$0xff] }
 0x277   : > { %1149 = vperm.xlu2 %2057, %v1123_v5   ;;  %v1302_v5 = vpop.f32.mrf.mxu0 }
 0x278   : > { %v1102_v42 = vpop.f32.mrf.mxu2 }
 0x279   : > { %v1103_v32 = vadd.f32 %v1102_v42, %v1042_v34 }
 0x27a   : > { %v3700_v4 = vpop.f32.mrf.mxu1 }
 0x27b   : > { %v1124_v28 = vadd.f32 %v1116_v24, %v1103_v32  ;;  %v3720_v32 = vpop.f32.mrf.mxu3 }
 0x27c   : > { %4626 = vst [vmem:[#allocation175_spill] sm:$0xff] %v3720_v32 }
 0x27d   : > { %1154 = vperm.xlu1 %2059, %v1124_v28   ;;  %1964 = vmatmul.msk.f32.gmra.mxu2 %vm1045_vm2, %v3536_v52  ;;  %v1044_v52 = vld [vmem:[%s4281_s9 + $0x38] sm:$0xff] }
 0x27f   : > { %1139 = vperm.xlu2 %2057, %v1121_v1   ;;  %v3722_v1 = vpop.f32.mrf.mxu0 }
 0x280   : > { %v1105_v12 = vpop.f32.mrf.mxu2  ;;  %4627 = vst [vmem:[#allocation176_spill] sm:$0xff] %v3722_v1 }
 0x281   : > { %v1106_v56 = vadd.f32 %v1105_v12, %v1043_v3 }
 0x282   : > { %v1334_v11 = vpop.f32.mrf.mxu1 }
 0x283   : > { %v1125_v37 = vadd.f32 %v1117_v62, %v1106_v56  ;;  %v3728_v3 = vpop.f32.mrf.mxu3 }
 0x284   : > { %4628 = vst [vmem:[#allocation177_spill] sm:$0xff] %v3728_v3 }
 0x285   : > { %1159 = vperm.xlu0 %2058, %v1125_v37   ;;  %1965 = vmatmul.msk.f32.gmra.mxu2 %vm1045_vm2, %v3551_v63 }
 0x287   : > { %v3730_v12 = vpop.f32.mrf.mxu0 }
 0x288   : > { %v1108_v34 = vpop.f32.mrf.mxu2  ;;  %4629 = vst [vmem:[#allocation178_spill] sm:$0xff] %v3730_v12 }
 0x289   : > { %v1109_v47 = vadd.f32 %v1108_v34, %v1044_v52 }
 0x28a   : > { %v3718_v42 = vpop.f32.mrf.mxu1 }
 0x28b   : > { %v1126_v24 = vadd.f32 %v1118_v26, %v1109_v47  ;;  %v3734_v52 = vpop.f32.mrf.mxu3 }
 0x28c   : > { %4630 = vst [vmem:[#allocation179_spill] sm:$0xff] %v3734_v52 }
 0x28d   : > { %1164 = vperm.xlu2 %2057, %v1126_v24  }
 0x28f   : > { %v3736_v34 = vpop.f32.mrf.mxu0 }
 0x290   : > { %v3724_v28 = vpop.f32.mrf.mxu2  ;;  %4631 = vst [vmem:[#allocation180_spill] sm:$0xff] %v3736_v34 }
 0x292   : > { %v3726_v63 = vpop.f32.mrf.mxu1 }
 0x293   : > { %v3744_v1 = vpop.f32.mrf.mxu3 }
 0x297   : > { %v3746_v32 = vpop.f32.mrf.mxu0 }
 0x298   : > { %v1211_v62 = vpop.f32.mrf.mxu2 }
 0x29a   : > { %v1343_v56 = vpop.f32.mrf.mxu1 }
 0x29b   : > { %v1416_v53 = vpop.f32.mrf.mxu3 }
 0x29f   : > { %v1457_v14 = vpop.f32.mrf.mxu0 }
 0x2a0   : > { %v3732_v37 = vpop.f32.mrf.mxu2 }
 0x2a2   : > { %v3738_v26 = vpop.f32.mrf.mxu1 }
 0x2a3   : > { %4632 = vst [vmem:[#allocation181_spill] sm:$0xff] %v3738_v26  ;;  %v3754_v34 = vpop.f32.mrf.mxu3 }
 0x2a7   : > { %v3756_v26 = vpop.f32.mrf.mxu0 }
 0x2a8   : > { %v3740_v47 = vpop.f32.mrf.mxu2 }
 0x2aa   : > { %v3742_v24 = vpop.f32.mrf.mxu1 }
 0x2ab   : > { %4633 = vst [vmem:[#allocation182_spill] sm:$0xff] %v3742_v24  ;;  %v3760_v45 = vpop.f32.mrf.mxu3 }
 0x2ac   : > { %4637 = vst [vmem:[#allocation186_spill] sm:$0xff] %v3760_v45 }
 0x2af   : > { %v3764_v6 = vpop.f32.mrf.mxu0 }
 0x2b0   : > { %v1220_v3 = vpop.f32.mrf.mxu2  ;;  %4639 = vst [vmem:[#allocation188_spill] sm:$0xff] %v3764_v6 }
 0x2b2   : > { %v3748_v12 = vpop.f32.mrf.mxu1 }
 0x2b3   : > { %4634 = vst [vmem:[#allocation183_spill] sm:$0xff] %v3748_v12 }
 0x2b8   : > { %v3750_v25 = vpop.f32.mrf.mxu2 }
 0x2b9   : > { %4635 = vst [vmem:[#allocation184_spill] sm:$0xff] %v3750_v25 }
 0x2ba   : > { %v3752_v52 = vpop.f32.mrf.mxu1 }
 0x2c0   : > { %v3758_v39 = vpop.f32.mrf.mxu2 }
 0x2c1   : > { %4636 = vst [vmem:[#allocation185_spill] sm:$0xff] %v3758_v39 }
 0x2c2   : > { %v1498_v24 = vpop.f32.mrf.mxu1 }
 0x2c8   : > { %v3762_v0 = vpop.f32.mrf.mxu2 }
 0x2c9   : > { %4638 = vst [vmem:[#allocation187_spill] sm:$0xff] %v3762_v0  ;;  %v1135_v12 = vpop.permute.xlu2 %1134 }
 0x2ca   : > { %v1212_v10 = vadd.f32 %v1211_v62, %v1135_v12  ;;  %v1253_v44 = vadd.f32 %v3646_v9, %v1135_v12  ;;  %v1294_v25 = vadd.f32 %v3652_v48, %v1135_v12  ;;  %v1335_v21 = vadd.f32 %v1334_v11, %v1135_v12  ;;  %v3768_v61 = vpop.f32.mrf.mxu1  ;;  %v1425_v9 = vpop.f32.mrf.mxu3 }
 0x2cb   : > { %v1417_v31 = vadd.f32 %v1416_v53, %v1135_v12  ;;  %v1458_v33 = vadd.f32 %v1457_v14, %v1135_v12  ;;  %v1499_v39 = vadd.f32 %v1498_v24, %v1135_v12 }
 0x2cc   : > { %2062 = vtanh.f32 %v1212_v10 }
 0x2cd   : > { %2064 = vtanh.f32 %v1253_v44  ;;  %v4640_v44 = vsub.f32 %v3073_v55, %v3108_v22 }
 0x2ce   : > { %2066 = vtanh.f32 %v1294_v25  ;;  %v4641_v25 = vld [vmem:[#allocation142_spill] sm:$0xff] }
 0x2cf   : > { %2068 = vtanh.f32 %v1335_v21  ;;  %v4642_v24 = vsub.f32 %v3102_v58, %v4641_v25  ;;  %v4648_v58 = vld [vmem:[#allocation149_spill] sm:$0xff] }
 0x2d0   : > { %2070 = vtanh.f32 %v1417_v31  ;;  %v3770_v0 = vpop.f32.mrf.mxu2  ;;  %v1466_v31 = vpop.f32.mrf.mxu0 }
 0x2d1   : > { %2072 = vtanh.f32 %v1458_v33  ;;  %v3772_v6 = vpop.permute.xlu2 %1149 }
 0x2d2   : > { %v2063_v62 = vpop.eup %2062  ;;  %2074 = vtanh.f32 %v1499_v39  ;;  %v1221_v48 = vadd.f32 %v1220_v3, %v3772_v6  ;;  %v1262_v11 = vadd.f32 %v1261_v30, %v3772_v6  ;;  %v1303_v10 = vadd.f32 %v1302_v5, %v3772_v6  ;;  %v4644_v5 = vld [vmem:[#allocation143_spill] sm:$0xff] }
 0x2d3   : > { %v2065_v14 = vpop.eup %2064  ;;  %v1591_v21 = vmul.f32 %v2063_v62, %v4640_v44  ;;  %v1344_v53 = vadd.f32 %v1343_v56, %v3772_v6  ;;  %v1426_v3 = vadd.f32 %v1425_v9, %v3772_v6  ;;  %v4645_v45 = vsub.f32 %v4643_v20, %v4644_v5  ;;  %v3790_v56 = vpop.f32.mrf.mxu1  ;;  %v4647_v44 = vld [vmem:[#allocation146_spill] sm:$0xff] }
 0x2d4   : > { %v2067_v33 = vpop.eup %2066  ;;  %v1592_v39 = vmul.f32 %v2065_v14, %v4642_v24  ;;  %2076 = vtanh.f32 %v1221_v48  ;;  %v1467_v55 = vadd.f32 %v1466_v31, %v3772_v6  ;;  %v4649_v14 = vsub.f32 %v4647_v44, %v4648_v58  ;;  %v4650_v24 = vld [vmem:[#allocation148_spill] sm:$0xff] }
 0x2d5   : > { %v2069_v30 = vpop.eup %2068  ;;  %v1593_v38 = vmul.f32 %v2067_v33, %v4645_v45  ;;  %v1655_v22 = vadd.f32 %v1591_v21, %v4646_v15  ;;  %2078 = vtanh.f32 %v1262_v11  ;;  %v4652_v20 = vsub.f32 %v4650_v24, %v4651_v46  ;;  %v4653_v33 = vld [vmem:[#allocation150_spill] sm:$0xff]  ;;  %v4660_v44 = vld [vmem:[#allocation104_spill] sm:$0xff] }
 0x2d6   : > { %v2071_v62 = vpop.eup %2070  ;;  %v1594_v25 = vmul.f32 %v2069_v30, %v4649_v14  ;;  %v1656_v9 = vadd.f32 %v1592_v39, %v3157_v54  ;;  %2080 = vtanh.f32 %v1303_v10  ;;  %v4654_v54 = vsub.f32 %v3146_v29, %v3177_v16  ;;  %v3833_v14 = vpop.f32.mrf.mxu3 }
 0x2d7   : > { %v2073_v48 = vpop.eup %2072  ;;  %v1596_v45 = vmul.f32 %v2071_v62, %v4652_v20  ;;  %v1657_v15 = vadd.f32 %v1593_v38, %v4653_v33  ;;  %1719 = vst [vmem:[%s3801_s12 + $0x40] sm:$0xff] %v1655_v22  ;;  %2082 = vtanh.f32 %v1344_v53  ;;  %v4655_v38 = vsub.f32 %v3149_v7, %v3186_v13  ;;  %v4662_v20 = vld [vmem:[#allocation101_spill] sm:$0xff] }
 0x2d8   : > { %v2075_v11 = vpop.eup %2074  ;;  %v1597_v10 = vmul.f32 %v2073_v48, %v4654_v54  ;;  %v1658_v21 = vadd.f32 %v1594_v25, %v3221_v27  ;;  %1720 = vst [vmem:[%s3801_s12 + $0x48] sm:$0xff] %v1656_v9  ;;  %2084 = vtanh.f32 %v1426_v3  ;;  %v1375_v46 = vpop.f32.mrf.mxu2  ;;  %v4657_v3 = vld [vmem:[#allocation103_spill] sm:$0xff]  ;;  %v2190_v25 = vld [vmem:[%s2526_s11 + $0x60] sm:$0xff] }
 0x2d9   : > { %v1598_v31 = vmul.f32 %v2075_v11, %v4655_v38  ;;  %v1660_v39 = vadd.f32 %v1596_v45, %v3251_v40  ;;  %1721 = vst [vmem:[%s3801_s12 + $0x50] sm:$0xff] %v1657_v15  ;;  %2086 = vtanh.f32 %v1467_v55  ;;  %v1376_v53 = vadd.f32 %v1375_v46, %v1135_v12  ;;  %v3814_v30 = vpop.permute.xlu2 %1139  ;;  %v4656_v12 = vld [vmem:[#allocation99_spill] sm:$0xff]  ;;  %v1130_v55 = vpop.permute.xlu1 %1129  ;;  %v4665_v15 = vld [vmem:[#allocation114_spill] sm:$0xff]  ;;  %v4666_v46 = vld [vmem:[#allocation109_spill] sm:$0xff] }
 0x2da   : > { %v2077_v16 = vpop.eup %2076  ;;  %v1661_v27 = vadd.f32 %v1597_v10, %v3317_v35  ;;  %1722 = vst [vmem:[%s3801_s12 + $0x58] sm:$0xff] %v1658_v21  ;;  %v1215_v29 = vadd.f32 %v3732_v37, %v3814_v30  ;;  %v1256_v7 = vadd.f32 %v3673_v19, %v3814_v30  ;;  %v4658_v5 = vsub.f32 %v4656_v12, %v4657_v3  ;;  %v4659_v37 = vld [vmem:[#allocation100_spill] sm:$0xff]  ;;  %v3844_v54 = vpop.f32.mrf.mxu0  ;;  %v4667_v38 = vld [vmem:[#allocation113_spill] sm:$0xff] }
 0x2db   : > { %v2079_v13 = vpop.eup %2078  ;;  %v1662_v40 = vadd.f32 %v1598_v31, %v3333_v49  ;;  %1724 = vst [vmem:[%s3801_s12 + $0x68] sm:$0xff] %v1660_v39  ;;  %2088 = vtanh.f32 %v1376_v53  ;;  %v1297_v35 = vadd.f32 %v3675_v60, %v3814_v30  ;;  %v4661_v58 = vsub.f32 %v4659_v37, %v4660_v44  ;;  %v2191_v49 = vld [vmem:[%s2534_s22 + $0x60] sm:$0xff]  ;;  %v4669_v39 = vld [vmem:[#allocation115_spill] sm:$0xff] }
 0x2dc   : > { %v1615_v22 = vmul.f32 %v2077_v16, %v4658_v5  ;;  %v2081_v62 = vpop.eup %2080  ;;  %1725 = vst [vmem:[%s3801_s12 + $0x70] sm:$0xff] %v1661_v27  ;;  %v626_v9 = vsub.f32 %v2190_v25, %v2191_v49  ;;  %v1338_v48 = vadd.f32 %v3718_v42, %v3814_v30  ;;  %v4663_v60 = vld [vmem:[#allocation105_spill] sm:$0xff]  ;;  %v1420_v10 = vadd.f32 %v3754_v34, %v3814_v30  ;;  %v4673_v34 = vld [vmem:[#allocation120_spill] sm:$0xff]  ;;  %v4675_v37 = vld [vmem:[#allocation119_spill] sm:$0xff] }
 0x2dd   : > { %v1616_v19 = vmul.f32 %v2079_v13, %v4661_v58  ;;  %v2083_v24 = vpop.eup %2082  ;;  %1726 = vst [vmem:[%s3801_s12 + $0x78] sm:$0xff] %v1662_v40  ;;  %v4664_v45 = vsub.f32 %v4662_v20, %v4663_v60  ;;  %2090 = vtanh.f32 %v1215_v29  ;;  %v4668_v42 = vsub.f32 %v4666_v46, %v4667_v38  ;;  %v4670_v13 = vld [vmem:[#allocation110_spill] sm:$0xff] }
 0x2de   : > { %v1679_v11 = vadd.f32 %v1615_v22, %v4665_v15  ;;  %v2085_v21 = vpop.eup %2084  ;;  %v1461_v16 = vadd.f32 %v3756_v26, %v3814_v30  ;;  %2092 = vtanh.f32 %v1256_v7  ;;  %v4671_v40 = vld [vmem:[#allocation118_spill] sm:$0xff]  ;;  %v1502_v29 = vadd.f32 %v3768_v61, %v3814_v30  ;;  %v1507_v22 = vpop.f32.mrf.mxu1  ;;  %v4679_v15 = vld [vmem:[#allocation125_spill] sm:$0xff] }
 0x2df   : > { %v1617_v33 = vmul.f32 %v2081_v62, %v4664_v45  ;;  %v1618_v31 = vmul.f32 %v2083_v24, %v4668_v42  ;;  %v1680_v53 = vadd.f32 %v1616_v19, %v4669_v39  ;;  %v2087_v27 = vpop.eup %2086  ;;  %v4672_v12 = vsub.f32 %v4670_v13, %v4671_v40  ;;  %v4674_v62 = vld [vmem:[#allocation111_spill] sm:$0xff]  ;;  %v3880_v45 = vld [vmem:[%s2534_s22 + $0xa0] sm:$0xff]  ;;  %v4682_v46 = vld [vmem:[#allocation126_spill] sm:$0xff] }
 0x2e0   : > { %1743 = vst [vmem:[%s3801_s12 + $0x100] sm:$0xff] %v1679_v11  ;;  %2094 = vtanh.f32 %v1297_v35  ;;  %v4676_v44 = vsub.f32 %v4674_v62, %v4675_v37  ;;  %v1209_v58 = vadd.f32 %v3724_v28, %v1130_v55  ;;  %v1378_v19 = vpop.f32.mrf.mxu2  ;;  %v1250_v61 = vadd.f32 %v3632_v43, %v1130_v55  ;;  %v4677_v35 = vld [vmem:[#allocation134_spill] sm:$0xff]  ;;  %v4687_v40 = vld [vmem:[#allocation132_spill] sm:$0xff]  ;;  %v4691_v62 = vld [vmem:[#allocation133_spill] sm:$0xff] }
 0x2e1   : > { %v1620_v3 = vmul.f32 %v2085_v21, %v4672_v12  ;;  %v1681_v5 = vadd.f32 %v1617_v33, %v4673_v34  ;;  %v1682_v7 = vadd.f32 %v1618_v31, %v3022_v50  ;;  %1744 = vst [vmem:[%s3801_s12 + $0x108] sm:$0xff] %v1680_v53  ;;  %2096 = vtanh.f32 %v1338_v48  ;;  %v2089_v25 = vpop.eup %2088  ;;  %v4681_v21 = vld [vmem:[#allocation123_spill] sm:$0xff]  ;;  %v3895_v53 = vpop.permute.xlu1 %1144 }
 0x2e2   : > { %v1621_v26 = vmul.f32 %v2087_v27, %v4676_v44  ;;  %2098 = vtanh.f32 %v1420_v10  ;;  %v1595_v50 = vmul.f32 %v2089_v25, %v626_v9  ;;  %v1291_v48 = vadd.f32 %v3634_v57, %v1130_v55  ;;  %v4678_v57 = vld [vmem:[#allocation122_spill] sm:$0xff]  ;;  %v4685_v27 = vld [vmem:[#allocation128_spill] sm:$0xff]  ;;  %v3903_v34 = vpop.f32.mrf.mxu3  ;;  %v3909_v44 = vpop.f32.mrf.mxu0 }
 0x2e3   : > { %v1684_v49 = vadd.f32 %v1620_v3, %v3040_v8  ;;  %1745 = vst [vmem:[%s3801_s12 + $0x110] sm:$0xff] %v1681_v5  ;;  %2100 = vtanh.f32 %v1461_v16  ;;  %v2091_v20 = vpop.eup %2090  ;;  %v1332_v28 = vadd.f32 %v3700_v4, %v1130_v55  ;;  %v1373_v60 = vadd.f32 %v3770_v0, %v1130_v55  ;;  %v3877_v8 = vld [vmem:[%s2526_s11 + $0xa0] sm:$0xff]  ;;  %v4684_v16 = vld [vmem:[#allocation124_spill] sm:$0xff]  ;;  %v4688_v5 = vld [vmem:[#allocation127_spill] sm:$0xff] }
 0x2e4   : > { %v1685_v24 = vadd.f32 %v1621_v26, %v4677_v35  ;;  %1746 = vst [vmem:[%s3801_s12 + $0x118] sm:$0xff] %v1682_v7  ;;  %2102 = vtanh.f32 %v1502_v29  ;;  %v634_v43 = vsub.f32 %v3877_v8, %v3880_v45  ;;  %v2093_v33 = vpop.eup %2092  ;;  %v1659_v9 = vadd.f32 %v1595_v50, %v3241_v41  ;;  %v4693_v25 = vld [vmem:[#allocation138_spill] sm:$0xff]  ;;  %v4022_v8 = vld [vmem:[%s2534_s22 + $0xe0] sm:$0xff] }
 0x2e5   : > { %1748 = vst [vmem:[%s3801_s12 + $0x128] sm:$0xff] %v1684_v49  ;;  %v4680_v11 = vsub.f32 %v4678_v57, %v4679_v15  ;;  %v1414_v4 = vadd.f32 %v3744_v1, %v1130_v55  ;;  %2104 = vtanh.f32 %v1209_v58  ;;  %v4683_v38 = vsub.f32 %v4681_v21, %v4682_v46  ;;  %v4692_v58 = vld [vmem:[#allocation131_spill] sm:$0xff]  ;;  %v4700_v15 = vld [vmem:[#allocation140_spill] sm:$0xff] }
 0x2e6   : > { %1749 = vst [vmem:[%s3801_s12 + $0x130] sm:$0xff] %v1685_v24  ;;  %v2095_v0 = vpop.eup %2094  ;;  %v1455_v31 = vadd.f32 %v3746_v32, %v1130_v55  ;;  %v1496_v39 = vadd.f32 %v3752_v52, %v1130_v55  ;;  %2106 = vtanh.f32 %v1250_v61  ;;  %v4686_v13 = vsub.f32 %v4684_v16, %v4685_v27  ;;  %v4689_v52 = vld [vmem:[#allocation129_spill] sm:$0xff]  ;;  %v4705_v16 = vld [vmem:[#allocation154_spill] sm:$0xff] }
 0x2e7   : > { %v1599_v10 = vmul.f32 %v2091_v20, %v4680_v11  ;;  %v1600_v42 = vmul.f32 %v2093_v33, %v4683_v38  ;;  %v2097_v41 = vpop.eup %2096  ;;  %1723 = vst [vmem:[%s3801_s12 + $0x60] sm:$0xff] %v1659_v9  ;;  %2108 = vtanh.f32 %v1291_v48  ;;  %v1508_v3 = vadd.f32 %v1507_v22, %v3772_v6  ;;  %v4695_v61 = vld [vmem:[#allocation137_spill] sm:$0xff]  ;;  %v4696_v20 = vld [vmem:[#allocation135_spill] sm:$0xff] }
 0x2e8   : > { %v1601_v1 = vmul.f32 %v2095_v0, %v4686_v13  ;;  %v2099_v32 = vpop.eup %2098  ;;  %v4690_v55 = vsub.f32 %v4688_v5, %v4689_v52  ;;  %2110 = vtanh.f32 %v1332_v28  ;;  %v1379_v26 = vadd.f32 %v1378_v19, %v3814_v30  ;;  %v3919_v50 = vpop.f32.mrf.mxu2  ;;  %v4697_v28 = vld [vmem:[#allocation139_spill] sm:$0xff]  ;;  %v4712_v5 = vld [vmem:[#allocation188_spill] sm:$0xff] }
 0x2e9   : > { %v1663_v12 = vadd.f32 %v1599_v10, %v4687_v40  ;;  %v1664_v37 = vadd.f32 %v1600_v42, %v4691_v62  ;;  %v2101_v7 = vpop.eup %2100  ;;  %v4694_v49 = vsub.f32 %v4692_v58, %v4693_v25  ;;  %2112 = vtanh.f32 %v1373_v60  ;;  %v3928_v60 = vpop.f32.mrf.mxu1  ;;  %v4703_v42 = vld [vmem:[#allocation159_spill] sm:$0xff] }
 0x2ea   : > { %v1602_v29 = vmul.f32 %v2097_v41, %v4690_v55  ;;  %v1665_v35 = vadd.f32 %v1601_v1, %v4695_v61  ;;  %v1218_v24 = vadd.f32 %v3740_v47, %v3895_v53  ;;  %v2103_v48 = vpop.eup %2102  ;;  %v4698_v30 = vsub.f32 %v4696_v20, %v4697_v28  ;;  %v4699_v47 = vld [vmem:[#allocation136_spill] sm:$0xff]  ;;  %v3951_v13 = vpop.permute.xlu2 %1164  ;;  %v4709_v1 = vld [vmem:[#allocation155_spill] sm:$0xff]  ;;  %v4718_v61 = vld [vmem:[#allocation166_spill] sm:$0xff] }
 0x2eb   : > { %v1604_v22 = vmul.f32 %v2099_v32, %v4694_v49  ;;  %1727 = vst [vmem:[%s3801_s12 + $0x80] sm:$0xff] %v1663_v12  ;;  %2114 = vtanh.f32 %v1414_v4  ;;  %v1259_v9 = vadd.f32 %v3696_v2, %v3895_v53  ;;  %v2105_v57 = vpop.eup %2104  ;;  %v4701_v11 = vsub.f32 %v4699_v47, %v4700_v15  ;;  %v4704_v41 = vld [vmem:[#allocation152_spill] sm:$0xff]  ;;  %v4711_v12 = vld [vmem:[#allocation158_spill] sm:$0xff]  ;;  %v4721_v28 = vld [vmem:[#allocation187_spill] sm:$0xff] }
 0x2ec   : > { %v1605_v19 = vmul.f32 %v2101_v7, %v4698_v30  ;;  %v1666_v33 = vadd.f32 %v1602_v29, %v3086_v17  ;;  %1728 = vst [vmem:[%s3801_s12 + $0x88] sm:$0xff] %v1664_v37  ;;  %2116 = vtanh.f32 %v1455_v31  ;;  %v1300_v17 = vadd.f32 %v3698_v51, %v3895_v53  ;;  %v2107_v4 = vpop.eup %2106  ;;  %v4713_v55 = vld [vmem:[#allocation156_spill] sm:$0xff]  ;;  %v4714_v29 = vld [vmem:[#allocation157_spill] sm:$0xff] }
 0x2ed   : > { %v1606_v10 = vmul.f32 %v2103_v48, %v4701_v11  ;;  %v1668_v0 = vadd.f32 %v1604_v22, %v3167_v36  ;;  %1729 = vst [vmem:[%s3801_s12 + $0x90] sm:$0xff] %v1665_v35  ;;  %2118 = vtanh.f32 %v1496_v39  ;;  %v4702_v2 = vsub.f32 %v3182_v59, %v3209_v23  ;;  %v2109_v36 = vpop.eup %2108  ;;  %v4708_v59 = vld [vmem:[#allocation153_spill] sm:$0xff]  ;;  %v4716_v7 = vld [vmem:[#allocation160_spill] sm:$0xff]  ;;  %v1434_v11 = vpop.f32.mrf.mxu3 }
 0x2ee   : > { %v1669_v21 = vadd.f32 %v1605_v19, %v3171_v18  ;;  %1730 = vst [vmem:[%s3801_s12 + $0x98] sm:$0xff] %v1666_v33  ;;  %v1341_v38 = vadd.f32 %v3726_v63, %v3895_v53  ;;  %v4706_v51 = vsub.f32 %v4704_v41, %v4705_v16  ;;  %2120 = vtanh.f32 %v1508_v3  ;;  %v4707_v18 = vld [vmem:[#allocation186_spill] sm:$0xff]  ;;  %v2111_v23 = vpop.eup %2110  ;;  %v4717_v22 = vld [vmem:[#allocation161_spill] sm:$0xff]  ;;  %v4720_v48 = vld [vmem:[#allocation164_spill] sm:$0xff]  ;;  %v1475_v41 = vpop.f32.mrf.mxu0 }
 0x2ef   : > { %v1583_v46 = vmul.f32 %v2105_v57, %v4702_v2  ;;  %v1670_v31 = vadd.f32 %v1606_v10, %v4703_v42  ;;  %1732 = vst [vmem:[%s3801_s12 + $0xa8] sm:$0xff] %v1668_v0  ;;  %v1423_v39 = vadd.f32 %v4707_v18, %v3895_v53  ;;  %v4710_v63 = vsub.f32 %v4708_v59, %v4709_v1  ;;  %v2113_v3 = vpop.eup %2112  ;;  %v4722_v33 = vld [vmem:[#allocation162_spill] sm:$0xff]  ;;  %v4723_v57 = vld [vmem:[#allocation167_spill] sm:$0xff]  ;;  %v4728_v2 = vld [vmem:[#allocation169_spill] sm:$0xff] }
 0x2f0   : > { %v1584_v27 = vmul.f32 %v2107_v4, %v4706_v51  ;;  %1733 = vst [vmem:[%s3801_s12 + $0xb0] sm:$0xff] %v1669_v21  ;;  %2122 = vtanh.f32 %v1379_v26  ;;  %v1464_v52 = vadd.f32 %v4712_v5, %v3895_v53  ;;  %v4715_v62 = vsub.f32 %v4713_v55, %v4714_v29  ;;  %v4726_v10 = vld [vmem:[#allocation179_spill] sm:$0xff]  ;;  %v3981_v4 = vpop.f32.mrf.mxu2  ;;  %v4731_v16 = vld [vmem:[#allocation180_spill] sm:$0xff]  ;;  %v4733_v18 = vld [vmem:[#allocation170_spill] sm:$0xff] }
 0x2f1   : > { %v1585_v40 = vmul.f32 %v2109_v36, %v4710_v63  ;;  %v1647_v32 = vadd.f32 %v1583_v46, %v4711_v12  ;;  %1734 = vst [vmem:[%s3801_s12 + $0xb8] sm:$0xff] %v1670_v31  ;;  %v1505_v25 = vadd.f32 %v3790_v56, %v3895_v53  ;;  %2124 = vtanh.f32 %v1218_v24  ;;  %v2115_v49 = vpop.eup %2114  ;;  %v4725_v56 = vld [vmem:[#allocation168_spill] sm:$0xff]  ;;  %v4727_v21 = vld [vmem:[#allocation163_spill] sm:$0xff]  ;;  %v4739_v55 = vld [vmem:[#allocation121_spill] sm:$0xff] }
 0x2f2   : > { %v1586_v37 = vmul.f32 %v2111_v23, %v4715_v62  ;;  %v1648_v58 = vadd.f32 %v1584_v27, %v4716_v7  ;;  %v4719_v26 = vsub.f32 %v4717_v22, %v4718_v61  ;;  %2126 = vtanh.f32 %v1259_v9  ;;  %v2117_v19 = vpop.eup %2116  ;;  %v4730_v42 = vld [vmem:[#allocation171_spill] sm:$0xff]  ;;  %v4732_v27 = vld [vmem:[#allocation165_spill] sm:$0xff]  ;;  %v4735_v1 = vld [vmem:[#allocation172_spill] sm:$0xff]  ;;  %v4003_v7 = vpop.f32.mrf.mxu1 }
 0x2f3   : > { %v1649_v20 = vadd.f32 %v1585_v40, %v4720_v48  ;;  %1711 = vst [vmem:[%s3801_s12] sm:$0xff] %v1647_v32  ;;  %v1230_v30 = vadd.f32 %v4721_v28, %v3951_v13  ;;  %v4724_v47 = vsub.f32 %v4722_v33, %v4723_v57  ;;  %2128 = vtanh.f32 %v1300_v17  ;;  %v2119_v9 = vpop.eup %2118  ;;  %v4736_v40 = vld [vmem:[#allocation183_spill] sm:$0xff]  ;;  %v4744_v28 = vld [vmem:[#allocation80_spill] sm:$0xff]  ;;  %v4019_v57 = vld [vmem:[%s2526_s11 + $0xe0] sm:$0xff] }
 0x2f4   : > { %v1587_v35 = vmul.f32 %v2113_v3, %v4719_v26  ;;  %v1650_v24 = vadd.f32 %v1586_v37, %v4725_v56  ;;  %1712 = vst [vmem:[%s3801_s12 + $0x8] sm:$0xff] %v1648_v58  ;;  %v1271_v0 = vadd.f32 %v4726_v10, %v3951_v13  ;;  %v4729_v46 = vsub.f32 %v4727_v21, %v4728_v2  ;;  %v2121_v51 = vpop.eup %2120  ;;  %v4738_v3 = vld [vmem:[#allocation112_spill] sm:$0xff]  ;;  %v4741_v58 = vld [vmem:[#allocation174_spill] sm:$0xff]  ;;  %v4011_v26 = vpop.permute.xlu1 %1154  ;;  %v4748_v56 = vld [vmem:[#allocation83_spill] sm:$0xff] }
 0x2f5   : > { %v1588_v15 = vmul.f32 %v2115_v49, %v4724_v47  ;;  %1713 = vst [vmem:[%s3801_s12 + $0x10] sm:$0xff] %v1649_v20  ;;  %2130 = vtanh.f32 %v1341_v38  ;;  %v1312_v17 = vadd.f32 %v4731_v16, %v3951_v13  ;;  %v4734_v23 = vsub.f32 %v4732_v27, %v4733_v18  ;;  %v4737_v38 = vld [vmem:[#allocation173_spill] sm:$0xff]  ;;  %v4751_v21 = vld [vmem:[#allocation84_spill] sm:$0xff] }
 0x2f6   : > { %v1589_v36 = vmul.f32 %v2117_v19, %v4729_v46  ;;  %v1651_v31 = vadd.f32 %v1587_v35, %v4730_v42  ;;  %1714 = vst [vmem:[%s3801_s12 + $0x18] sm:$0xff] %v1650_v24  ;;  %2132 = vtanh.f32 %v1423_v39  ;;  %v1353_v12 = vadd.f32 %v4736_v40, %v3951_v13  ;;  %v2123_v32 = vpop.eup %2122  ;;  %v4742_v35 = vld [vmem:[#allocation145_spill] sm:$0xff]  ;;  %v4761_v40 = vld [vmem:[#allocation95_spill] sm:$0xff] }
 0x2f7   : > { %v1590_v59 = vmul.f32 %v2119_v9, %v4734_v23  ;;  %v1652_v63 = vadd.f32 %v1588_v15, %v4735_v1  ;;  %v4740_v29 = vsub.f32 %v4738_v3, %v4739_v55  ;;  %2134 = vtanh.f32 %v1464_v52  ;;  %v2125_v39 = vpop.eup %2124  ;;  %v4743_v20 = vld [vmem:[#allocation77_spill] sm:$0xff]  ;;  %v4747_v15 = vld [vmem:[#allocation78_spill] sm:$0xff]  ;;  %v4750_v9 = vld [vmem:[#allocation79_spill] sm:$0xff] }
 0x2f8   : > { %v1653_v5 = vadd.f32 %v1589_v36, %v4737_v38  ;;  %1715 = vst [vmem:[%s3801_s12 + $0x20] sm:$0xff] %v1651_v31  ;;  %v1435_v37 = vadd.f32 %v1434_v11, %v3951_v13  ;;  %v1603_v22 = vmul.f32 %v2123_v32, %v634_v43  ;;  %2136 = vtanh.f32 %v1505_v25  ;;  %v2127_v52 = vpop.eup %2126  ;;  %v4746_v25 = vld [vmem:[#allocation147_spill] sm:$0xff]  ;;  %v4753_v36 = vld [vmem:[#allocation88_spill] sm:$0xff]  ;;  %v4047_v1 = vpop.f32.mrf.mxu2 }
 0x2f9   : > { %v1622_v62 = vmul.f32 %v2121_v51, %v4740_v29  ;;  %v1654_v49 = vadd.f32 %v1590_v59, %v4741_v58  ;;  %1716 = vst [vmem:[%s3801_s12 + $0x28] sm:$0xff] %v1652_v63  ;;  %v1476_v61 = vadd.f32 %v1475_v41, %v3951_v13  ;;  %v4745_v19 = vsub.f32 %v4743_v20, %v4744_v28  ;;  %v2129_v43 = vpop.eup %2128  ;;  %v4754_v31 = vld [vmem:[#allocation184_spill] sm:$0xff]  ;;  %v4756_v51 = vld [vmem:[#allocation94_spill] sm:$0xff]  ;;  %v4759_v23 = vld [vmem:[#allocation175_spill] sm:$0xff] }
 0x2fa   : > { %1717 = vst [vmem:[%s3801_s12 + $0x30] sm:$0xff] %v1653_v5  ;;  %2138 = vtanh.f32 %v1230_v30  ;;  %v642_v45 = vsub.f32 %v4019_v57, %v4022_v8  ;;  %v1667_v47 = vadd.f32 %v1603_v22, %v4746_v25  ;;  %v4749_v24 = vsub.f32 %v4747_v15, %v4748_v56  ;;  %v4760_v63 = vld [vmem:[#allocation86_spill] sm:$0xff]  ;;  %v4764_v55 = vld [vmem:[#allocation176_spill] sm:$0xff]  ;;  %v4770_v28 = vld [vmem:[#allocation93_spill] sm:$0xff] }
 0x2fb   : > { %v1686_v48 = vadd.f32 %v1622_v62, %v4742_v35  ;;  %v1607_v33 = vmul.f32 %v2125_v39, %v4745_v19  ;;  %1718 = vst [vmem:[%s3801_s12 + $0x38] sm:$0xff] %v1654_v49  ;;  %2140 = vtanh.f32 %v1271_v0  ;;  %v1382_v30 = vadd.f32 %v3919_v50, %v3895_v53  ;;  %v2131_v10 = vpop.eup %2130  ;;  %v4755_v0 = vld [vmem:[#allocation82_spill] sm:$0xff]  ;;  %v4758_v50 = vld [vmem:[#allocation89_spill] sm:$0xff]  ;;  %v4765_v62 = vld [vmem:[#allocation87_spill] sm:$0xff] }
 0x2fc   : > { %v1608_v11 = vmul.f32 %v2127_v52, %v4749_v24  ;;  %v4752_v2 = vsub.f32 %v4750_v9, %v4751_v21  ;;  %2142 = vtanh.f32 %v1312_v17  ;;  %v1224_v41 = vadd.f32 %v4754_v31, %v4011_v26  ;;  %v2133_v16 = vpop.eup %2132  ;;  %1731 = vst [vmem:[%s3801_s12 + $0xa0] sm:$0xff] %v1667_v47  ;;  %v4763_v5 = vld [vmem:[#allocation98_spill] sm:$0xff]  ;;  %v4766_v39 = vld [vmem:[#allocation96_spill] sm:$0xff]  ;;  %v4769_v35 = vld [vmem:[#allocation181_spill] sm:$0xff] }
 0x2fd   : > { %1750 = vst [vmem:[%s3801_s12 + $0x138] sm:$0xff] %v1686_v48  ;;  %v1671_v42 = vadd.f32 %v1607_v33, %v4753_v36  ;;  %v4757_v27 = vsub.f32 %v4755_v0, %v4756_v51  ;;  %2144 = vtanh.f32 %v1353_v12  ;;  %v1265_v59 = vadd.f32 %v4759_v23, %v4011_v26  ;;  %v2135_v17 = vpop.eup %2134  ;;  %v4768_v22 = vld [vmem:[#allocation102_spill] sm:$0xff]  ;;  %v4774_v56 = vld [vmem:[#allocation116_spill] sm:$0xff]  ;;  %v4775_v24 = vld [vmem:[#allocation17_spill] sm:$0xff]  ;;  %v1516_v0 = vpop.f32.mrf.mxu1 }
 0x2fe   : > { %v1609_v46 = vmul.f32 %v2129_v43, %v4752_v2  ;;  %v1672_v18 = vadd.f32 %v1608_v11, %v4758_v50  ;;  %v4762_v32 = vsub.f32 %v4760_v63, %v4761_v40  ;;  %2146 = vtanh.f32 %v1435_v37  ;;  %v2137_v12 = vpop.eup %2136  ;;  %v4771_v37 = vld [vmem:[#allocation97_spill] sm:$0xff]  ;;  %v4773_v43 = vld [vmem:[#allocation108_spill] sm:$0xff]  ;;  %v4780_v36 = vld [vmem:[#allocation23_spill] sm:$0xff] }
 0x2ff   : > { %v1610_v53 = vmul.f32 %v2131_v10, %v4757_v27  ;;  %1735 = vst [vmem:[%s3801_s12 + $0xc0] sm:$0xff] %v1671_v42  ;;  %v1306_v29 = vadd.f32 %v4764_v55, %v4011_v26  ;;  %v4767_v58 = vsub.f32 %v4765_v62, %v4766_v39  ;;  %2148 = vtanh.f32 %v1476_v61  ;;  %v4776_v11 = vld [vmem:[#allocation21_spill] sm:$0xff]  ;;  %v4782_v27 = vld [vmem:[#allocation19_spill] sm:$0xff]  ;;  %v4786_v40 = vld [vmem:[#allocation22_spill] sm:$0xff] }
 0x300   : > { %v1612_v38 = vmul.f32 %v2133_v16, %v4762_v32  ;;  %v1673_v3 = vadd.f32 %v1609_v46, %v4763_v5  ;;  %1736 = vst [vmem:[%s3801_s12 + $0xc8] sm:$0xff] %v1672_v18  ;;  %v1347_v48 = vadd.f32 %v4769_v35, %v4011_v26  ;;  %v2139_v20 = vpop.eup %2138  ;;  %v4772_v19 = vsub.f32 %v4770_v28, %v4771_v37  ;;  %v4785_v50 = vld [vmem:[#allocation25_spill] sm:$0xff]  ;;  %v4787_v32 = vld [vmem:[#allocation27_spill] sm:$0xff]  ;;  %v4790_v62 = vld [vmem:[#allocation26_spill] sm:$0xff] }
 0x301   : > { %v1613_v49 = vmul.f32 %v2135_v17, %v4767_v58  ;;  %v1674_v52 = vadd.f32 %v1610_v53, %v4768_v22  ;;  %2150 = vtanh.f32 %v1382_v30  ;;  %v1429_v47 = vadd.f32 %v3833_v14, %v4011_v26  ;;  %v2141_v15 = vpop.eup %2140  ;;  %v4778_v30 = vld [vmem:[#allocation117_spill] sm:$0xff]  ;;  %v4779_v14 = vld [vmem:[#allocation18_spill] sm:$0xff]  ;;  %v4783_v53 = vld [vmem:[#allocation24_spill] sm:$0xff] }
 0x302   : > { %v1614_v33 = vmul.f32 %v2137_v12, %v4772_v19  ;;  %v1676_v25 = vadd.f32 %v1612_v38, %v4773_v43  ;;  %1737 = vst [vmem:[%s3801_s12 + $0xd0] sm:$0xff] %v1673_v3  ;;  %v4777_v10 = vsub.f32 %v4775_v24, %v4776_v11  ;;  %v1470_v21 = vadd.f32 %v3844_v54, %v4011_v26  ;;  %v2143_v2 = vpop.eup %2142  ;;  %v4090_v23 = vld [vmem:[%s2526_s11 + $0x120] sm:$0xff]  ;;  %v4791_v39 = vld [vmem:[#allocation32_spill] sm:$0xff]  ;;  %v4793_v22 = vld [vmem:[#allocation30_spill] sm:$0xff] }
 0x303   : > { %v1677_v61 = vadd.f32 %v1613_v49, %v4774_v56  ;;  %1738 = vst [vmem:[%s3801_s12 + $0xd8] sm:$0xff] %v1674_v52  ;;  %2152 = vtanh.f32 %v1224_v41  ;;  %v4781_v42 = vsub.f32 %v4779_v14, %v4780_v36  ;;  %v1511_v16 = vadd.f32 %v3928_v60, %v4011_v26  ;;  %v2145_v51 = vpop.eup %2144  ;;  %v4093_v17 = vld [vmem:[%s2534_s22 + $0x120] sm:$0xff]  ;;  %v4097_v60 = vpop.permute.xlu0 %1159  ;;  %v4794_v37 = vld [vmem:[#allocation20_spill] sm:$0xff]  ;;  %v4805_v36 = vld [vmem:[#allocation178_spill] sm:$0xff] }
 0x304   : > { %v1639_v9 = vmul.f32 %v2139_v20, %v4777_v10  ;;  %v1678_v46 = vadd.f32 %v1614_v33, %v4778_v30  ;;  %1740 = vst [vmem:[%s3801_s12 + $0xe8] sm:$0xff] %v1676_v25  ;;  %2154 = vtanh.f32 %v1265_v59  ;;  %v4784_v54 = vsub.f32 %v4782_v27, %v4783_v53  ;;  %v2147_v59 = vpop.eup %2146  ;;  %v4789_v3 = vld [vmem:[#allocation29_spill] sm:$0xff]  ;;  %v1390_v20 = vpop.f32.mrf.mxu2  ;;  %v4799_v56 = vld [vmem:[#allocation48_spill] sm:$0xff]  ;;  %v4803_v30 = vld [vmem:[#allocation39_spill] sm:$0xff] }
 0x305   : > { %v1640_v31 = vmul.f32 %v2141_v15, %v4781_v42  ;;  %1741 = vst [vmem:[%s3801_s12 + $0xf0] sm:$0xff] %v1677_v61  ;;  %2156 = vtanh.f32 %v1306_v29  ;;  %v650_v63 = vsub.f32 %v4090_v23, %v4093_v17  ;;  %v4788_v38 = vsub.f32 %v4786_v40, %v4787_v32  ;;  %v2149_v12 = vpop.eup %2148  ;;  %v4798_v43 = vld [vmem:[#allocation185_spill] sm:$0xff]  ;;  %v4806_v8 = vld [vmem:[#allocation107_spill] sm:$0xff]  ;;  %v4810_v27 = vld [vmem:[#allocation182_spill] sm:$0xff] }
 0x306   : > { %v1641_v41 = vmul.f32 %v2143_v2, %v4784_v54  ;;  %v1703_v18 = vadd.f32 %v1639_v9, %v4785_v50  ;;  %1742 = vst [vmem:[%s3801_s12 + $0xf8] sm:$0xff] %v1678_v46  ;;  %2158 = vtanh.f32 %v1347_v48  ;;  %v1385_v29 = vadd.f32 %v3981_v4, %v3772_v6  ;;  %v4795_v48 = vld [vmem:[#allocation28_spill] sm:$0xff]  ;;  %v4797_v6 = vld [vmem:[#allocation37_spill] sm:$0xff]  ;;  %v4814_v40 = vld [vmem:[#allocation46_spill] sm:$0xff] }
 0x307   : > { %v1642_v5 = vmul.f32 %v2145_v51, %v4788_v38  ;;  %v1704_v55 = vadd.f32 %v1640_v31, %v4789_v3  ;;  %v4792_v58 = vsub.f32 %v4790_v62, %v4791_v39  ;;  %2160 = vtanh.f32 %v1429_v47  ;;  %v2151_v28 = vpop.eup %2150  ;;  %v4800_v24 = vld [vmem:[#allocation177_spill] sm:$0xff]  ;;  %v4807_v31 = vld [vmem:[#allocation36_spill] sm:$0xff]  ;;  %v4815_v3 = vld [vmem:[#allocation43_spill] sm:$0xff] }
 0x308   : > { %v1705_v52 = vadd.f32 %v1641_v41, %v4793_v22  ;;  %1767 = vst [vmem:[%s3801_s12 + $0x1c0] sm:$0xff] %v1703_v18  ;;  %v1517_v35 = vadd.f32 %v1516_v0, %v3951_v13  ;;  %v4796_v19 = vsub.f32 %v4794_v37, %v4795_v48  ;;  %2162 = vtanh.f32 %v1470_v21  ;;  %v4801_v9 = vld [vmem:[#allocation33_spill] sm:$0xff]  ;;  %v4802_v21 = vld [vmem:[#allocation35_spill] sm:$0xff]  ;;  %v4811_v41 = vld [vmem:[#allocation38_spill] sm:$0xff] }
 0x309   : > { %v1644_v49 = vmul.f32 %v2147_v59, %v4792_v58  ;;  %v1706_v4 = vadd.f32 %v1642_v5, %v4797_v6  ;;  %1768 = vst [vmem:[%s3801_s12 + $0x1c8] sm:$0xff] %v1704_v55  ;;  %v1227_v25 = vadd.f32 %v4798_v43, %v4097_v60  ;;  %v2153_v15 = vpop.eup %2152  ;;  %v1611_v61 = vmul.f32 %v2151_v28, %v642_v45  ;;  %v4812_v50 = vld [vmem:[#allocation41_spill] sm:$0xff]  ;;  %v4816_v55 = vld [vmem:[#allocation50_spill] sm:$0xff]  ;;  %v4818_v62 = vld [vmem:[#allocation47_spill] sm:$0xff] }
 0x30a   : > { %v1645_v33 = vmul.f32 %v2149_v12, %v4796_v19  ;;  %1769 = vst [vmem:[%s3801_s12 + $0x1d0] sm:$0xff] %v1705_v52  ;;  %2164 = vtanh.f32 %v1511_v16  ;;  %v1268_v11 = vadd.f32 %v4800_v24, %v4097_v60  ;;  %v2155_v10 = vpop.eup %2154  ;;  %v4804_v46 = vsub.f32 %v4802_v21, %v4803_v30  ;;  %v4808_v16 = vld [vmem:[#allocation40_spill] sm:$0xff]  ;;  %v4820_v52 = vld [vmem:[#allocation51_spill] sm:$0xff]  ;;  %v4822_v28 = vld [vmem:[#allocation54_spill] sm:$0xff] }
 0x30b   : > { %v1708_v47 = vadd.f32 %v1644_v49, %v4799_v56  ;;  %1770 = vst [vmem:[%s3801_s12 + $0x1d8] sm:$0xff] %v1706_v4  ;;  %2166 = vtanh.f32 %v1385_v29  ;;  %v1309_v42 = vadd.f32 %v4805_v36, %v4097_v60  ;;  %v2157_v57 = vpop.eup %2156  ;;  %v1675_v45 = vadd.f32 %v1611_v61, %v4806_v8  ;;  %v4819_v22 = vld [vmem:[#allocation44_spill] sm:$0xff]  ;;  %v4824_v6 = vld [vmem:[#allocation53_spill] sm:$0xff]  ;;  %v4826_v43 = vld [vmem:[#allocation59_spill] sm:$0xff] }
 0x30c   : > { %v1709_v2 = vadd.f32 %v1645_v33, %v4801_v9  ;;  %v1623_v14 = vmul.f32 %v2153_v15, %v4804_v46  ;;  %v4809_v0 = vsub.f32 %v4807_v31, %v4808_v16  ;;  %2168 = vtanh.f32 %v1517_v35  ;;  %v2159_v54 = vpop.eup %2158  ;;  %v4823_v33 = vld [vmem:[#allocation45_spill] sm:$0xff]  ;;  %v1393_v56 = vpop.f32.mrf.mxu2  ;;  %v4832_v36 = vld [vmem:[#allocation90_spill] sm:$0xff]  ;;  %v4837_v17 = vld [vmem:[#allocation55_spill] sm:$0xff] }
 0x30d   : > { %1772 = vst [vmem:[%s3801_s12 + $0x1e8] sm:$0xff] %v1708_v47  ;;  %v1350_v53 = vadd.f32 %v4810_v27, %v4097_v60  ;;  %v4813_v18 = vsub.f32 %v4811_v41, %v4812_v50  ;;  %v1432_v38 = vadd.f32 %v3903_v34, %v4097_v60  ;;  %2170 = vtanh.f32 %v1227_v25  ;;  %v2161_v5 = vpop.eup %2160  ;;  %v4827_v61 = vld [vmem:[#allocation49_spill] sm:$0xff]  ;;  %v4836_v31 = vld [vmem:[#allocation130_spill] sm:$0xff] }
 0x30e   : > { %v1624_v51 = vmul.f32 %v2155_v10, %v4809_v0  ;;  %1773 = vst [vmem:[%s3801_s12 + $0x1f0] sm:$0xff] %v1709_v2  ;;  %v1687_v32 = vadd.f32 %v1623_v14, %v4814_v40  ;;  %v4817_v29 = vsub.f32 %v4815_v3, %v4816_v55  ;;  %v1473_v58 = vadd.f32 %v3909_v44, %v4097_v60  ;;  %v2163_v49 = vpop.eup %2162  ;;  %v4828_v24 = vld [vmem:[#allocation57_spill] sm:$0xff]  ;;  %v4830_v10 = vld [vmem:[#allocation72_spill] sm:$0xff]  ;;  %v4845_v40 = vld [vmem:[#allocation63_spill] sm:$0xff] }
 0x30f   : > { %v1625_v59 = vmul.f32 %v2157_v57, %v4813_v18  ;;  %1739 = vst [vmem:[%s3801_s12 + $0xe0] sm:$0xff] %v1675_v45  ;;  %2172 = vtanh.f32 %v1268_v11  ;;  %v4821_v35 = vsub.f32 %v4819_v22, %v4820_v52  ;;  %v1514_v48 = vadd.f32 %v4003_v7, %v4097_v60  ;;  %v4831_v30 = vld [vmem:[#allocation81_spill] sm:$0xff]  ;;  %v4833_v57 = vld [vmem:[#allocation31_spill] sm:$0xff] }
 0x310   : > { %v1626_v12 = vmul.f32 %v2159_v54, %v4817_v29  ;;  %v1688_v39 = vadd.f32 %v1624_v51, %v4818_v62  ;;  %1751 = vst [vmem:[%s3801_s12 + $0x140] sm:$0xff] %v1687_v32  ;;  %2174 = vtanh.f32 %v1309_v42  ;;  %v2165_v19 = vpop.eup %2164  ;;  %v4825_v4 = vsub.f32 %v4823_v33, %v4824_v6  ;;  %v4840_v51 = vld [vmem:[#allocation52_spill] sm:$0xff]  ;;  %v4842_v54 = vld [vmem:[#allocation62_spill] sm:$0xff]  ;;  %v2198_v22 = vld [vmem:[%s2526_s11 + $0x160] sm:$0xff] }
 0x311   : > { %v1628_v34 = vmul.f32 %v2161_v5, %v4821_v35  ;;  %v1689_v37 = vadd.f32 %v1625_v59, %v4822_v28  ;;  %2176 = vtanh.f32 %v1350_v53  ;;  %v1388_v15 = vadd.f32 %v4047_v1, %v4011_v26  ;;  %v2167_v47 = vpop.eup %2166  ;;  %v4841_v53 = vld [vmem:[#allocation56_spill] sm:$0xff]  ;;  %v4844_v59 = vld [vmem:[#allocation58_spill] sm:$0xff]  ;;  %v4847_v5 = vld [vmem:[#allocation65_spill] sm:$0xff] }
 0x312   : > { %v1629_v44 = vmul.f32 %v2163_v49, %v4825_v4  ;;  %v1690_v25 = vadd.f32 %v1626_v12, %v4826_v43  ;;  %1752 = vst [vmem:[%s3801_s12 + $0x148] sm:$0xff] %v1688_v39  ;;  %v4829_v7 = vsub.f32 %v4827_v61, %v4828_v24  ;;  %2178 = vtanh.f32 %v1432_v38  ;;  %v2169_v21 = vpop.eup %2168  ;;  %v4848_v29 = vld [vmem:[#allocation60_spill] sm:$0xff]  ;;  %v2199_v52 = vld [vmem:[%s2534_s22 + $0x160] sm:$0xff]  ;;  %v4855_v33 = vld [vmem:[#allocation71_spill] sm:$0xff] }
 0x313   : > { %v1692_v9 = vadd.f32 %v1628_v34, %v4830_v10  ;;  %1753 = vst [vmem:[%s3801_s12 + $0x150] sm:$0xff] %v1689_v37  ;;  %v1391_v2 = vadd.f32 %v1390_v20, %v4097_v60  ;;  %v1619_v26 = vmul.f32 %v2167_v47, %v650_v63  ;;  %2180 = vtanh.f32 %v1473_v58  ;;  %v2171_v14 = vpop.eup %2170  ;;  %v4834_v60 = vld [vmem:[#allocation34_spill] sm:$0xff]  ;;  %v4838_v63 = vld [vmem:[#allocation61_spill] sm:$0xff]  ;;  %v4849_v12 = vld [vmem:[#allocation64_spill] sm:$0xff] }
 0x314   : > { %v1630_v11 = vmul.f32 %v2165_v19, %v4829_v7  ;;  %v1693_v46 = vadd.f32 %v1629_v44, %v4831_v30  ;;  %1754 = vst [vmem:[%s3801_s12 + $0x158] sm:$0xff] %v1690_v25  ;;  %v1394_v1 = vadd.f32 %v1393_v56, %v3951_v13  ;;  %v4835_v20 = vsub.f32 %v4833_v57, %v4834_v60  ;;  %v4851_v58 = vld [vmem:[#allocation66_spill] sm:$0xff]  ;;  %v4852_v28 = vld [vmem:[#allocation68_spill] sm:$0xff]  ;;  %v4853_v37 = vld [vmem:[#allocation73_spill] sm:$0xff] }
 0x315   : > { %1756 = vst [vmem:[%s3801_s12 + $0x168] sm:$0xff] %v1692_v9  ;;  %2182 = vtanh.f32 %v1514_v48  ;;  %v2173_v45 = vpop.eup %2172  ;;  %v1683_v23 = vadd.f32 %v1619_v26, %v4836_v31  ;;  %v4839_v16 = vsub.f32 %v4837_v17, %v4838_v63  ;;  %v4843_v41 = vsub.f32 %v4841_v53, %v4842_v54  ;;  %v2200_v4 = vld [vmem:[%s2526_s11 + $0x1a0] sm:$0xff]  ;;  %v4859_v56 = vld [vmem:[#allocation74_spill] sm:$0xff]  ;;  %v4861_v24 = vld [vmem:[#allocation75_spill] sm:$0xff] }
 0x316   : > { %v1694_v42 = vadd.f32 %v1630_v11, %v4832_v36  ;;  %v1646_v8 = vmul.f32 %v2169_v21, %v4835_v20  ;;  %1757 = vst [vmem:[%s3801_s12 + $0x170] sm:$0xff] %v1693_v46  ;;  %2184 = vtanh.f32 %v1388_v15  ;;  %v2175_v0 = vpop.eup %2174  ;;  %v4846_v32 = vsub.f32 %v4844_v59, %v4845_v40  ;;  %v2201_v44 = vld [vmem:[%s2534_s22 + $0x1a0] sm:$0xff]  ;;  %v4862_v21 = vld [vmem:[#allocation70_spill] sm:$0xff]  ;;  %v4863_v30 = vld [vmem:[#allocation76_spill] sm:$0xff] }
 0x317   : > { %v1631_v13 = vmul.f32 %v2171_v14, %v4839_v16  ;;  %v1632_v50 = vmul.f32 %v2173_v45, %v4843_v41  ;;  %2186 = vtanh.f32 %v1391_v2  ;;  %v2177_v18 = vpop.eup %2176  ;;  %1747 = vst [vmem:[%s3801_s12 + $0x120] sm:$0xff] %v1683_v23  ;;  %v4850_v62 = vsub.f32 %v4848_v29, %v4849_v12  ;;  %v4858_v15 = vld [vmem:[#allocation69_spill] sm:$0xff]  ;;  %v4868_v23 = vld [vmem:[#allocation67_spill] sm:$0xff] }
 0x318   : > { %1758 = vst [vmem:[%s3801_s12 + $0x178] sm:$0xff] %v1694_v42  ;;  %v1710_v27 = vadd.f32 %v1646_v8, %v4840_v51  ;;  %v1633_v38 = vmul.f32 %v2175_v0, %v4846_v32  ;;  %2188 = vtanh.f32 %v1394_v1  ;;  %v2179_v55 = vpop.eup %2178  ;;  %v658_v35 = vsub.f32 %v2198_v22, %v2199_v52  ;;  %v2202_v11 = vld [vmem:[%s2526_s11 + $0x1e0] sm:$0xff]  ;;  %v4865_v1 = vld [vmem:[#allocation91_spill] sm:$0xff]  ;;  %v4866_v42 = vld [vmem:[#allocation92_spill] sm:$0xff]  ;;  %s1788_s11 = sshll.u32 %s3801_s12, 4  ;;  %s1789_s11 = int_to_ptr.vmem [resolvable:$true] %s1788_s11 }
 0x319   : > { %v1695_v3 = vadd.f32 %v1631_v13, %v4847_v5  ;;  %v1634_v39 = vmul.f32 %v2177_v18, %v4850_v62  ;;  %v1696_v49 = vadd.f32 %v1632_v50, %v4851_v58  ;;  %v2181_v34 = vpop.eup %2180  ;;  %v4854_v48 = vsub.f32 %v4852_v28, %v4853_v37  ;;  %v2203_v10 = vld [vmem:[%s2534_s22 + $0x1e0] sm:$0xff]  ;;  %s1790_s22 = sshll.u32 %s1787_s21, 4  ;;  %v4867_v8 = vld [vmem:[#allocation106_spill] sm:$0xff]  ;;  %s1791_s22 = int_to_ptr.hbm [resolvable:$true] %s1790_s22 }
 0x31a   : > { %1774 = vst [vmem:[%s3801_s12 + $0x1f8] sm:$0xff] %v1710_v27  ;;  %v1697_v6 = vadd.f32 %v1633_v38, %v4855_v33  ;;  %v666_v43 = vsub.f32 %v2200_v4, %v2201_v44  ;;  %v4860_v47 = vsub.f32 %v4858_v15, %v4859_v56  ;;  %v674_v9 = vsub.f32 %v2202_v11, %v2203_v10  ;;  %v4870_v16 = vld [vmem:[#allocation85_spill] sm:$0xff]  ;;  %v4871_v0 = vld [vmem:[#allocation42_spill] sm:$0xff]  ;;  %s2278_s23 = sshra.s32 %s1791_s22, 4  ;;  %s2279_s23 = int_to_ptr.hbm [resolvable:$true] %s2278_s23 }
 0x31b   : > { %v1636_v19 = vmul.f32 %v2179_v55, %v4854_v48  ;;  %1759 = vst [vmem:[%s3801_s12 + $0x180] sm:$0xff] %v1695_v3  ;;  %v2183_v25 = vpop.eup %2182  ;;  %v1698_v7 = vadd.f32 %v1634_v39, %v4861_v24  ;;  %v4864_v46 = vsub.f32 %v4862_v21, %v4863_v30  ;;  %s2280_s10 = scalar_lea.hbm %s2279_s23, 512  ;;  %p2285_p10 = scmp.lt.s32.totalorder %s2279_s23, %s4857_s18 }
 0x31c   : > { %v1637_v61 = vmul.f32 %v2181_v34, %v4860_v47  ;;  %1760 = vst [vmem:[%s3801_s12 + $0x188] sm:$0xff] %v1696_v49  ;;  %v2185_v2 = vpop.eup %2184  ;;  %p2281_p6 = scmp.ne.s32.totalorder %s2279_s23, %s2280_s10  ;;  %p2286_p2 = scmp.lt.s32.totalorder %s2284_s25, %s2280_s10 }
 0x31d   : > { %v1638_v26 = vmul.f32 %v2183_v25, %v4864_v46  ;;  %v1700_v14 = vadd.f32 %v1636_v19, %v4865_v1  ;;  %1761 = vst [vmem:[%s3801_s12 + $0x190] sm:$0xff] %v1697_v6  ;;  %v2187_v36 = vpop.eup %2186  ;;  %v1627_v60 = vmul.f32 %v2185_v2, %v658_v35 }
 0x31e   : > { %v1701_v57 = vadd.f32 %v1637_v61, %v4866_v42  ;;  %1762 = vst [vmem:[%s3801_s12 + $0x198] sm:$0xff] %v1698_v7  ;;  %v2189_v20 = vpop.eup %2188  ;;  %v1635_v31 = vmul.f32 %v2187_v36, %v666_v43  ;;  %p2282_p13 = pnand %p2281_p6, %p2447_p11  ;;  %p2287_p9 = por %p2286_p2, %p2285_p10 }
 0x31f   : > { %v1702_v45 = vadd.f32 %v1638_v26, %v4867_v8  ;;  %1764 = vst [vmem:[%s3801_s12 + $0x1a8] sm:$0xff] %v1700_v14  ;;  %v1691_v17 = vadd.f32 %v1627_v60, %v4868_v23  ;;  %v1643_v63 = vmul.f32 %v2189_v20, %v674_v9 }
 0x320   : > { %1765 = vst [vmem:[%s3801_s12 + $0x1b0] sm:$0xff] %v1701_v57  ;;  %v1699_v13 = vadd.f32 %v1635_v31, %v4870_v16  ;;  %p2283_p3 = pneg %p2282_p13 }
 0x321   : > { %1766 = vst [vmem:[%s3801_s12 + $0x1b8] sm:$0xff] %v1702_v45  ;;  %v1707_v51 = vadd.f32 %v1643_v63, %v4871_v0 }
 0x322   : > { %1755 = vst [vmem:[%s3801_s12 + $0x160] sm:$0xff] %v1691_v17  ;;  %p2288_p0 = pnand %p2287_p9, %p2283_p3 }
 0x323   : > { %1763 = vst [vmem:[%s3801_s12 + $0x1a0] sm:$0xff] %v1699_v13 }
 0x324   : > { %1771 = vst [vmem:[%s3801_s12 + $0x1e0] sm:$0xff] %v1707_v51 }
 0x325   : > { %2291 = shalt.err (!%p2288_p0)
}
 0x326   : > { %s2340_s0 = smov 1024   ;;  %s2341_s29 = smov 64  }
 0x327   : > { %2004 = dma.vmem_to_hbm [thread:$0]  (%p2447_p11), %s1789_s11, 8192, %s1791_s22, %s1776_s19, %s2340_s0, %s2340_s0, %s2341_s29  }
 0x328 PF: > { %s4872_s12 = sld [smem:[#allocation11_spill]]  ;;  %p4874_p1 = scmp.ge.s32.totalorder %s2334_s16, 2 }
 0x32a   : > { %p2014_p4 = pnand %p4874_p1, %p2451_p12 }
 0x32c   : > { %p2015_p7 = pneg %p2014_p4 }
 0x32e   : > { %s1805_s17 = sand.u32 1, %s4872_s12  }
 0x32f   : > { %s1806_s20 = scalar_lea.sflag [#allocation4], %s1805_s17 }
 0x330   : > { %2317 = dma.done.wait (%p2015_p7), %s1806_s20, 8192  }
 0x331   : > { %2319 = vsyncadd (%p2015_p7), %s1806_s20, 4294959104  ;;  %s4875_s16 = sld [smem:[#allocation13_spill]]  ;;  %s4878_s13 = smov %s2326_s14 }
 0x332   : > { %s4876_s15 = sld [smem:[#allocation12_spill]] }
 0x333   : > { %s4877_s21 = sld [smem:[#allocation14_spill]] }
 0x337   : > { %p26_p5 = scmp.ge.s32.totalorder %s4875_s16, 4  }
 0x338   : > { %s4879_s14 = smov %s4876_s15 }
 0x339   : > { %s4880_s15 = smov %s4877_s21  ;;  %28 = sbr.rel (!%p26_p5) target bundleno = 10 (0xa), region = 118 }
 0x33e   :  { %1812 = vsyncpa [#allocation3], 1 }
 0x33f   :  { %1814 = vsyncpa [#allocation3 + $0x1], 1 }
 0x340   :  { %1815 = vsyncpa [#allocation6], 1 }
 0x341   :  { %1817 = vsyncpa [#allocation6 + $0x1], 1 }
 0x342   :  { %1818 = vsyncpa [#allocation4], 1 }
 0x343   :  { %1820 = vsyncpa [#allocation4 + $0x1], 1 }

</bundles_post_ra>
